<compile_context>
chip_gen: v5e
topology: v5e:2x2
jax: 0.10.0
libtpu: 0.0.40
codegen_flags: <defaults>
</compile_context>

<pallas_src>
import functools

import jax
import jax.numpy as jnp
import numpy as np
from jax.experimental import pallas as pl
from jax.experimental.pallas import tpu as pltpu


# ------------------------------ Pallas kernel -------------------------------

def _conv_pool_stage(src_ref, w_ref, b_ref, dst_ref, *, m_out, k=5):
    """valid kxk conv + bias + ReLU + 2x2 max-pool as Toeplitz matmuls.

    src_ref : rows = per-image spatial rows, lanes = in_col*Cin + ci (0-padded)
    w_ref   : (2k, 128, 128) bf16, w_ref[2*kh+pw] = Toeplitz weight for kernel
              row kh and output-column parity pw; cols = out_col_half*Cout + co
    b_ref   : (1, 128) f32 bias tiled over out_col_half
    dst_ref : pooled output written to rows [0, m_out)
    """
    f32, bf16 = jnp.float32, jnp.bfloat16
    accs = [None] * 4                       # indexed by 2*row_parity + col_parity
    for ph in (0, 1):                       # row parity of the 2x2 pool window
        for kh in range(k):
            lhs = src_ref[pl.ds(ph + kh, m_out, 2), :].astype(bf16)
            for pw in (0, 1):               # col parity of the 2x2 pool window
                d = jnp.dot(lhs, w_ref[2 * kh + pw],
                            preferred_element_type=f32)
                i = 2 * ph + pw
                accs[i] = d if accs[i] is None else accs[i] + d
    pooled = jnp.maximum(jnp.maximum(accs[0], accs[1]),
                         jnp.maximum(accs[2], accs[3]))
    dst_ref[pl.ds(0, m_out), :] = jnp.maximum(pooled + b_ref[...], 0.0)


def _lenet_kernel(x_ref, w1_ref, b1_ref, w2_ref, b2_ref,
                  wf1_ref, bf1_ref, wf2_ref, bf2_ref, wf3_ref, bf3_ref,
                  out_ref, p1_ref, p2_ref, *, batch):
    f32, bf16 = jnp.float32, jnp.bfloat16

    # conv1(3->6,5x5)+ReLU+pool : x -> p1   (rows b*16+h, lanes w*6+c)
    _conv_pool_stage(x_ref, w1_ref, b1_ref, p1_ref, m_out=16 * batch)

    # conv2(6->16,5x5)+ReLU+pool : p1 -> p2 (rows b*8+h, lanes w*16+c)
    _conv_pool_stage(p1_ref, w2_ref, b2_ref, p2_ref, m_out=8 * batch - 3)

    # fc1 (400->120): 5 partial K=80 matmuls, one per spatial row h; the
    # stride-8 row read gathers row h of every image -> batch rows in order.
    acc = None
    for h in range(5):
        lhs = p2_ref[pl.ds(h, batch, 8), :].astype(bf16)
        d = jnp.dot(lhs, wf1_ref[h], preferred_element_type=f32)
        acc = d if acc is None else acc + d
    h1 = jnp.maximum(acc + bf1_ref[...], 0.0)

    # fc2 (120->84) + ReLU, fc3 (84->10)
    h2 = jnp.dot(h1.astype(bf16), wf2_ref[...], preferred_element_type=f32)
    h2 = jnp.maximum(h2 + bf2_ref[...], 0.0)
    h3 = jnp.dot(h2.astype(bf16), wf3_ref[...], preferred_element_type=f32)
    out_ref[...] = h3 + bf3_ref[...]


# -------------------------- host-side weight packing ------------------------

def pack_params(params):
    """One-time repack of PyTorch-layout params into the kernel layout:
    Toeplitz-expanded bf16 conv weights split by output-column parity,
    lane-tiled conv biases, permuted/padded bf16 FC weights."""
    npf32, jbf16 = np.float32, jnp.bfloat16

    def conv_pack(w, b, ow):
        cout, cin, k, _ = w.shape
        owh = ow // 2
        assert owh * cout <= 128
        wnp = np.asarray(w, npf32)
        wt = np.zeros((2 * k, 128, 128), npf32)
        for kh in range(k):
            for pw in range(2):
                for j in range(owh):
                    for kw in range(k):
                        col_in = 2 * j + pw + kw           # input spatial col
                        assert (col_in + 1) * cin <= 128
                        wt[2 * kh + pw,
                           col_in * cin:(col_in + 1) * cin,
                           j * cout:(j + 1) * cout] = wnp[:, :, kh, kw].T
        bt = np.zeros((1, 128), npf32)
        bt[0, :owh * cout] = np.tile(np.asarray(b, npf32), owh)
        return jnp.asarray(wt, jbf16), jnp.asarray(bt)

    w1t, b1t = conv_pack(params["conv1_w"], params["conv1_b"], 28)
    w2t, b2t = conv_pack(params["conv2_w"], params["conv2_b"], 10)

    # fc1: torch flatten order is (c, h, w); kernel lane order is w*16 + c,
    # split over spatial row h into 5 partial (80 -> 120) matmuls.
    w = np.asarray(params["fc1_w"], npf32).reshape(120, 16, 5, 5)  # (o,c,h,w)
    wf1 = np.zeros((5, 128, 128), npf32)
    for h in range(5):
        wf1[h, :80, :120] = w[:, :, h, :].transpose(2, 1, 0).reshape(80, 120)
    bf1 = np.zeros((1, 128), npf32)
    bf1[0, :120] = np.asarray(params["fc1_b"], npf32)

    wf2 = np.zeros((128, 128), npf32)
    wf2[:120, :84] = np.asarray(params["fc2_w"], npf32).T
    bf2 = np.zeros((1, 128), npf32)
    bf2[0, :84] = np.asarray(params["fc2_b"], npf32)

    wf3 = np.zeros((128, 10), npf32)
    wf3[:84, :] = np.asarray(params["fc3_w"], npf32).T
    bf3 = np.asarray(params["fc3_b"], npf32).reshape(1, 10)

    return (w1t, b1t, w2t, b2t,
            jnp.asarray(wf1, jbf16), jnp.asarray(bf1),
            jnp.asarray(wf2, jbf16), jnp.asarray(bf2),
            jnp.asarray(wf3, jbf16), jnp.asarray(bf3))


# --------------------------------- wrapper ----------------------------------

def lenet_forward(x_nchw, packed):
    B, C, H, W = x_nchw.shape
    assert (C, H, W) == (3, 32, 32), "LeNet expects 3x32x32 inputs"
    # layout plumbing only: NCHW -> rows (b, h), lanes (w, c), pad lanes to 128
    # and add 8 spare rows so the stride-2 windowed reads stay in bounds.
    x2d = jnp.transpose(x_nchw, (0, 2, 3, 1)).reshape(B * H, W * C)
    x2d = jnp.pad(x2d, ((0, 8), (0, 128 - W * C)))

    return pl.pallas_call(
        functools.partial(_lenet_kernel, batch=B),
        out_shape=jax.ShapeDtypeStruct((B, 10), jnp.float32),
        in_specs=[pl.BlockSpec(memory_space=pltpu.MemorySpace.VMEM)] * 11,
        out_specs=pl.BlockSpec(memory_space=pltpu.MemorySpace.VMEM),
        scratch_shapes=[pltpu.VMEM((16 * B, 128), jnp.float32),   # pooled conv1
                        pltpu.VMEM((8 * B, 128), jnp.float32)],   # pooled conv2
    )(x2d, *packed)


# ------------------------- pure-JAX reference (check) -----------------------

def lenet_reference(x, p):
    """Reference with the same arithmetic as the kernel: bf16 matmul operands,
    f32 accumulation / epilogue."""
    bf = lambda a: a.astype(jnp.bfloat16).astype(jnp.float32)

    def conv(inp, w, b):
        out = jax.lax.conv_general_dilated(
            bf(inp), bf(w), window_strides=(1, 1), padding="VALID",
            dimension_numbers=("NCHW", "OIHW", "NCHW"))
        return jax.nn.relu(out + b.reshape(1, -1, 1, 1))

    def pool(z):
        B, C, H, W = z.shape
        return z.reshape(B, C, H // 2, 2, W // 2, 2).max(axis=(3, 5))

    out = pool(conv(x, p["conv1_w"], p["conv1_b"]))
    out = pool(conv(out, p["conv2_w"], p["conv2_b"]))
    out = out.reshape(out.shape[0], -1)                       # (B, 400) c,h,w
    out = jax.nn.relu(bf(out) @ bf(p["fc1_w"]).T + p["fc1_b"])
    out = jax.nn.relu(bf(out) @ bf(p["fc2_w"]).T + p["fc2_b"])
    return bf(out) @ bf(p["fc3_w"]).T + p["fc3_b"]


def init_params(key):
    """Deterministic synthetic params with PyTorch-style shapes and fan-in scaling."""
    ks = jax.random.split(key, 10)

    def u(k, shape, fan_in):
        bound = 1.0 / (fan_in ** 0.5)
        return jax.random.uniform(k, shape, jnp.float32, -bound, bound)

    return {
        "conv1_w": u(ks[0], (6, 3, 5, 5), 3 * 25),
        "conv1_b": u(ks[1], (6,), 3 * 25),
        "conv2_w": u(ks[2], (16, 6, 5, 5), 6 * 25),
        "conv2_b": u(ks[3], (16,), 6 * 25),
        "fc1_w":   u(ks[4], (120, 400), 400),
        "fc1_b":   u(ks[5], (120,), 400),
        "fc2_w":   u(ks[6], (84, 120), 120),
        "fc2_b":   u(ks[7], (84,), 120),
        "fc3_w":   u(ks[8], (10, 84), 84),
        "fc3_b":   u(ks[9], (10,), 84),
    }


if __name__ == "__main__":
    key = jax.random.PRNGKey(0)
    pkey, xkey = jax.random.split(key)
    params = init_params(pkey)
    packed = pack_params(params)                 # one-time weight repack
    # LeNet's fc1 (16*5*5) implies 32x32 spatial input; keep batch small (2).
    x = jax.random.normal(xkey, (2, 3, 32, 32), jnp.float32)

    out = jax.block_until_ready(jax.jit(lenet_forward)(x, packed))
    assert out.shape == (2, 10) and out.dtype == jnp.float32

    ref = jax.block_until_ready(jax.jit(lenet_reference)(x, params))
    assert jnp.allclose(out, ref, rtol=2e-2, atol=2e-2), (out, ref)
    print("KERNEL_OK")
</pallas_src>

<mosaic_0001>
module attributes {stable_mosaic.version = 11 : i64} {
  func.func @_lenet_kernel(%arg0: memref<72x128xf32, #tpu.memory_space<vmem>>, %arg1: memref<10x128x128xbf16, #tpu.memory_space<vmem>>, %arg2: memref<1x128xf32, #tpu.memory_space<vmem>>, %arg3: memref<10x128x128xbf16, #tpu.memory_space<vmem>>, %arg4: memref<1x128xf32, #tpu.memory_space<vmem>>, %arg5: memref<5x128x128xbf16, #tpu.memory_space<vmem>>, %arg6: memref<1x128xf32, #tpu.memory_space<vmem>>, %arg7: memref<128x128xbf16, #tpu.memory_space<vmem>>, %arg8: memref<1x128xf32, #tpu.memory_space<vmem>>, %arg9: memref<128x10xbf16, #tpu.memory_space<vmem>>, %arg10: memref<1x10xf32, #tpu.memory_space<vmem>>, %arg11: memref<2x10xf32, #tpu.memory_space<vmem>>, %arg12: memref<32x128xf32, #tpu.memory_space<vmem>>, %arg13: memref<16x128xf32, #tpu.memory_space<vmem>>) attributes {dimension_semantics = [], scalar_prefetch = 0 : i64, scratch_operands = 2 : i64, tpu.core_type = #tpu.core_type<tc>} {
    %c0 = arith.constant 0 : index
    %c0_0 = arith.constant 0 : index
    %0 = tpu.strided_load %arg0[%c0, %c0_0] {strides = array<i32: 2, 1>} : memref<72x128xf32, #tpu.memory_space<vmem>>, vector<32x128xf32>
    %1 = arith.truncf %0 : vector<32x128xf32> to vector<32x128xbf16>
    %c0_1 = arith.constant 0 : index
    %c0_2 = arith.constant 0 : index
    %c0_3 = arith.constant 0 : index
    %2 = vector.load %arg1[%c0_1, %c0_2, %c0_3] : memref<10x128x128xbf16, #tpu.memory_space<vmem>>, vector<1x128x128xbf16>
    %3 = vector.shape_cast %2 : vector<1x128x128xbf16> to vector<128x128xbf16>
    %cst = arith.constant dense<0.000000e+00> : vector<32x128xf32>
    %4 = tpu.matmul %1, %3, %cst {dimension_numbers = #tpu.dot_dimension_numbers<[1], [0], [0], [1], [0, 0, 1, 1], [], []>} : vector<32x128xbf16>, vector<128x128xbf16>, vector<32x128xf32> -> vector<32x128xf32>
    %c1 = arith.constant 1 : index
    %c0_4 = arith.constant 0 : index
    %c0_5 = arith.constant 0 : index
    %5 = vector.load %arg1[%c1, %c0_4, %c0_5] : memref<10x128x128xbf16, #tpu.memory_space<vmem>>, vector<1x128x128xbf16>
    %6 = vector.shape_cast %5 : vector<1x128x128xbf16> to vector<128x128xbf16>
    %cst_6 = arith.constant dense<0.000000e+00> : vector<32x128xf32>
    %7 = tpu.matmul %1, %6, %cst_6 {dimension_numbers = #tpu.dot_dimension_numbers<[1], [0], [0], [1], [0, 0, 1, 1], [], []>} : vector<32x128xbf16>, vector<128x128xbf16>, vector<32x128xf32> -> vector<32x128xf32>
    %c1_7 = arith.constant 1 : index
    %c0_8 = arith.constant 0 : index
    %8 = tpu.strided_load %arg0[%c1_7, %c0_8] {strides = array<i32: 2, 1>} : memref<72x128xf32, #tpu.memory_space<vmem>>, vector<32x128xf32>
    %9 = arith.truncf %8 : vector<32x128xf32> to vector<32x128xbf16>
    %c2 = arith.constant 2 : index
    %c0_9 = arith.constant 0 : index
    %c0_10 = arith.constant 0 : index
    %10 = vector.load %arg1[%c2, %c0_9, %c0_10] : memref<10x128x128xbf16, #tpu.memory_space<vmem>>, vector<1x128x128xbf16>
    %11 = vector.shape_cast %10 : vector<1x128x128xbf16> to vector<128x128xbf16>
    %cst_11 = arith.constant dense<0.000000e+00> : vector<32x128xf32>
    %12 = tpu.matmul %9, %11, %cst_11 {dimension_numbers = #tpu.dot_dimension_numbers<[1], [0], [0], [1], [0, 0, 1, 1], [], []>} : vector<32x128xbf16>, vector<128x128xbf16>, vector<32x128xf32> -> vector<32x128xf32>
    %13 = arith.addf %4, %12 : vector<32x128xf32>
    %c3 = arith.constant 3 : index
    %c0_12 = arith.constant 0 : index
    %c0_13 = arith.constant 0 : index
    %14 = vector.load %arg1[%c3, %c0_12, %c0_13] : memref<10x128x128xbf16, #tpu.memory_space<vmem>>, vector<1x128x128xbf16>
    %15 = vector.shape_cast %14 : vector<1x128x128xbf16> to vector<128x128xbf16>
    %cst_14 = arith.constant dense<0.000000e+00> : vector<32x128xf32>
    %16 = tpu.matmul %9, %15, %cst_14 {dimension_numbers = #tpu.dot_dimension_numbers<[1], [0], [0], [1], [0, 0, 1, 1], [], []>} : vector<32x128xbf16>, vector<128x128xbf16>, vector<32x128xf32> -> vector<32x128xf32>
    %17 = arith.addf %7, %16 : vector<32x128xf32>
    %c2_15 = arith.constant 2 : index
    %c0_16 = arith.constant 0 : index
    %18 = tpu.strided_load %arg0[%c2_15, %c0_16] {strides = array<i32: 2, 1>} : memref<72x128xf32, #tpu.memory_space<vmem>>, vector<32x128xf32>
    %19 = arith.truncf %18 : vector<32x128xf32> to vector<32x128xbf16>
    %c4 = arith.constant 4 : index
    %c0_17 = arith.constant 0 : index
    %c0_18 = arith.constant 0 : index
    %20 = vector.load %arg1[%c4, %c0_17, %c0_18] : memref<10x128x128xbf16, #tpu.memory_space<vmem>>, vector<1x128x128xbf16>
    %21 = vector.shape_cast %20 : vector<1x128x128xbf16> to vector<128x128xbf16>
    %cst_19 = arith.constant dense<0.000000e+00> : vector<32x128xf32>
    %22 = tpu.matmul %19, %21, %cst_19 {dimension_numbers = #tpu.dot_dimension_numbers<[1], [0], [0], [1], [0, 0, 1, 1], [], []>} : vector<32x128xbf16>, vector<128x128xbf16>, vector<32x128xf32> -> vector<32x128xf32>
    %23 = arith.addf %13, %22 : vector<32x128xf32>
    %c5 = arith.constant 5 : index
    %c0_20 = arith.constant 0 : index
    %c0_21 = arith.constant 0 : index
    %24 = vector.load %arg1[%c5, %c0_20, %c0_21] : memref<10x128x128xbf16, #tpu.memory_space<vmem>>, vector<1x128x128xbf16>
    %25 = vector.shape_cast %24 : vector<1x128x128xbf16> to vector<128x128xbf16>
    %cst_22 = arith.constant dense<0.000000e+00> : vector<32x128xf32>
    %26 = tpu.matmul %19, %25, %cst_22 {dimension_numbers = #tpu.dot_dimension_numbers<[1], [0], [0], [1], [0, 0, 1, 1], [], []>} : vector<32x128xbf16>, vector<128x128xbf16>, vector<32x128xf32> -> vector<32x128xf32>
    %27 = arith.addf %17, %26 : vector<32x128xf32>
    %c3_23 = arith.constant 3 : index
    %c0_24 = arith.constant 0 : index
    %28 = tpu.strided_load %arg0[%c3_23, %c0_24] {strides = array<i32: 2, 1>} : memref<72x128xf32, #tpu.memory_space<vmem>>, vector<32x128xf32>
    %29 = arith.truncf %28 : vector<32x128xf32> to vector<32x128xbf16>
    %c6 = arith.constant 6 : index
    %c0_25 = arith.constant 0 : index
    %c0_26 = arith.constant 0 : index
    %30 = vector.load %arg1[%c6, %c0_25, %c0_26] : memref<10x128x128xbf16, #tpu.memory_space<vmem>>, vector<1x128x128xbf16>
    %31 = vector.shape_cast %30 : vector<1x128x128xbf16> to vector<128x128xbf16>
    %cst_27 = arith.constant dense<0.000000e+00> : vector<32x128xf32>
    %32 = tpu.matmul %29, %31, %cst_27 {dimension_numbers = #tpu.dot_dimension_numbers<[1], [0], [0], [1], [0, 0, 1, 1], [], []>} : vector<32x128xbf16>, vector<128x128xbf16>, vector<32x128xf32> -> vector<32x128xf32>
    %33 = arith.addf %23, %32 : vector<32x128xf32>
    %c7 = arith.constant 7 : index
    %c0_28 = arith.constant 0 : index
    %c0_29 = arith.constant 0 : index
    %34 = vector.load %arg1[%c7, %c0_28, %c0_29] : memref<10x128x128xbf16, #tpu.memory_space<vmem>>, vector<1x128x128xbf16>
    %35 = vector.shape_cast %34 : vector<1x128x128xbf16> to vector<128x128xbf16>
    %cst_30 = arith.constant dense<0.000000e+00> : vector<32x128xf32>
    %36 = tpu.matmul %29, %35, %cst_30 {dimension_numbers = #tpu.dot_dimension_numbers<[1], [0], [0], [1], [0, 0, 1, 1], [], []>} : vector<32x128xbf16>, vector<128x128xbf16>, vector<32x128xf32> -> vector<32x128xf32>
    %37 = arith.addf %27, %36 : vector<32x128xf32>
    %c4_31 = arith.constant 4 : index
    %c0_32 = arith.constant 0 : index
    %38 = tpu.strided_load %arg0[%c4_31, %c0_32] {strides = array<i32: 2, 1>} : memref<72x128xf32, #tpu.memory_space<vmem>>, vector<32x128xf32>
    %39 = arith.truncf %38 : vector<32x128xf32> to vector<32x128xbf16>
    %c8 = arith.constant 8 : index
    %c0_33 = arith.constant 0 : index
    %c0_34 = arith.constant 0 : index
    %40 = vector.load %arg1[%c8, %c0_33, %c0_34] : memref<10x128x128xbf16, #tpu.memory_space<vmem>>, vector<1x128x128xbf16>
    %41 = vector.shape_cast %40 : vector<1x128x128xbf16> to vector<128x128xbf16>
    %cst_35 = arith.constant dense<0.000000e+00> : vector<32x128xf32>
    %42 = tpu.matmul %39, %41, %cst_35 {dimension_numbers = #tpu.dot_dimension_numbers<[1], [0], [0], [1], [0, 0, 1, 1], [], []>} : vector<32x128xbf16>, vector<128x128xbf16>, vector<32x128xf32> -> vector<32x128xf32>
    %43 = arith.addf %33, %42 : vector<32x128xf32>
    %c9 = arith.constant 9 : index
    %c0_36 = arith.constant 0 : index
    %c0_37 = arith.constant 0 : index
    %44 = vector.load %arg1[%c9, %c0_36, %c0_37] : memref<10x128x128xbf16, #tpu.memory_space<vmem>>, vector<1x128x128xbf16>
    %45 = vector.shape_cast %44 : vector<1x128x128xbf16> to vector<128x128xbf16>
    %cst_38 = arith.constant dense<0.000000e+00> : vector<32x128xf32>
    %46 = tpu.matmul %39, %45, %cst_38 {dimension_numbers = #tpu.dot_dimension_numbers<[1], [0], [0], [1], [0, 0, 1, 1], [], []>} : vector<32x128xbf16>, vector<128x128xbf16>, vector<32x128xf32> -> vector<32x128xf32>
    %47 = arith.addf %37, %46 : vector<32x128xf32>
    %c1_39 = arith.constant 1 : index
    %c0_40 = arith.constant 0 : index
    %48 = tpu.strided_load %arg0[%c1_39, %c0_40] {strides = array<i32: 2, 1>} : memref<72x128xf32, #tpu.memory_space<vmem>>, vector<32x128xf32>
    %49 = arith.truncf %48 : vector<32x128xf32> to vector<32x128xbf16>
    %c0_41 = arith.constant 0 : index
    %c0_42 = arith.constant 0 : index
    %c0_43 = arith.constant 0 : index
    %50 = vector.load %arg1[%c0_41, %c0_42, %c0_43] : memref<10x128x128xbf16, #tpu.memory_space<vmem>>, vector<1x128x128xbf16>
    %51 = vector.shape_cast %50 : vector<1x128x128xbf16> to vector<128x128xbf16>
    %cst_44 = arith.constant dense<0.000000e+00> : vector<32x128xf32>
    %52 = tpu.matmul %49, %51, %cst_44 {dimension_numbers = #tpu.dot_dimension_numbers<[1], [0], [0], [1], [0, 0, 1, 1], [], []>} : vector<32x128xbf16>, vector<128x128xbf16>, vector<32x128xf32> -> vector<32x128xf32>
    %c1_45 = arith.constant 1 : index
    %c0_46 = arith.constant 0 : index
    %c0_47 = arith.constant 0 : index
    %53 = vector.load %arg1[%c1_45, %c0_46, %c0_47] : memref<10x128x128xbf16, #tpu.memory_space<vmem>>, vector<1x128x128xbf16>
    %54 = vector.shape_cast %53 : vector<1x128x128xbf16> to vector<128x128xbf16>
    %cst_48 = arith.constant dense<0.000000e+00> : vector<32x128xf32>
    %55 = tpu.matmul %49, %54, %cst_48 {dimension_numbers = #tpu.dot_dimension_numbers<[1], [0], [0], [1], [0, 0, 1, 1], [], []>} : vector<32x128xbf16>, vector<128x128xbf16>, vector<32x128xf32> -> vector<32x128xf32>
    %c2_49 = arith.constant 2 : index
    %c0_50 = arith.constant 0 : index
    %56 = tpu.strided_load %arg0[%c2_49, %c0_50] {strides = array<i32: 2, 1>} : memref<72x128xf32, #tpu.memory_space<vmem>>, vector<32x128xf32>
    %57 = arith.truncf %56 : vector<32x128xf32> to vector<32x128xbf16>
    %c2_51 = arith.constant 2 : index
    %c0_52 = arith.constant 0 : index
    %c0_53 = arith.constant 0 : index
    %58 = vector.load %arg1[%c2_51, %c0_52, %c0_53] : memref<10x128x128xbf16, #tpu.memory_space<vmem>>, vector<1x128x128xbf16>
    %59 = vector.shape_cast %58 : vector<1x128x128xbf16> to vector<128x128xbf16>
    %cst_54 = arith.constant dense<0.000000e+00> : vector<32x128xf32>
    %60 = tpu.matmul %57, %59, %cst_54 {dimension_numbers = #tpu.dot_dimension_numbers<[1], [0], [0], [1], [0, 0, 1, 1], [], []>} : vector<32x128xbf16>, vector<128x128xbf16>, vector<32x128xf32> -> vector<32x128xf32>
    %61 = arith.addf %52, %60 : vector<32x128xf32>
    %c3_55 = arith.constant 3 : index
    %c0_56 = arith.constant 0 : index
    %c0_57 = arith.constant 0 : index
    %62 = vector.load %arg1[%c3_55, %c0_56, %c0_57] : memref<10x128x128xbf16, #tpu.memory_space<vmem>>, vector<1x128x128xbf16>
    %63 = vector.shape_cast %62 : vector<1x128x128xbf16> to vector<128x128xbf16>
    %cst_58 = arith.constant dense<0.000000e+00> : vector<32x128xf32>
    %64 = tpu.matmul %57, %63, %cst_58 {dimension_numbers = #tpu.dot_dimension_numbers<[1], [0], [0], [1], [0, 0, 1, 1], [], []>} : vector<32x128xbf16>, vector<128x128xbf16>, vector<32x128xf32> -> vector<32x128xf32>
    %65 = arith.addf %55, %64 : vector<32x128xf32>
    %c3_59 = arith.constant 3 : index
    %c0_60 = arith.constant 0 : index
    %66 = tpu.strided_load %arg0[%c3_59, %c0_60] {strides = array<i32: 2, 1>} : memref<72x128xf32, #tpu.memory_space<vmem>>, vector<32x128xf32>
    %67 = arith.truncf %66 : vector<32x128xf32> to vector<32x128xbf16>
    %c4_61 = arith.constant 4 : index
    %c0_62 = arith.constant 0 : index
    %c0_63 = arith.constant 0 : index
    %68 = vector.load %arg1[%c4_61, %c0_62, %c0_63] : memref<10x128x128xbf16, #tpu.memory_space<vmem>>, vector<1x128x128xbf16>
    %69 = vector.shape_cast %68 : vector<1x128x128xbf16> to vector<128x128xbf16>
    %cst_64 = arith.constant dense<0.000000e+00> : vector<32x128xf32>
    %70 = tpu.matmul %67, %69, %cst_64 {dimension_numbers = #tpu.dot_dimension_numbers<[1], [0], [0], [1], [0, 0, 1, 1], [], []>} : vector<32x128xbf16>, vector<128x128xbf16>, vector<32x128xf32> -> vector<32x128xf32>
    %71 = arith.addf %61, %70 : vector<32x128xf32>
    %c5_65 = arith.constant 5 : index
    %c0_66 = arith.constant 0 : index
    %c0_67 = arith.constant 0 : index
    %72 = vector.load %arg1[%c5_65, %c0_66, %c0_67] : memref<10x128x128xbf16, #tpu.memory_space<vmem>>, vector<1x128x128xbf16>
    %73 = vector.shape_cast %72 : vector<1x128x128xbf16> to vector<128x128xbf16>
    %cst_68 = arith.constant dense<0.000000e+00> : vector<32x128xf32>
    %74 = tpu.matmul %67, %73, %cst_68 {dimension_numbers = #tpu.dot_dimension_numbers<[1], [0], [0], [1], [0, 0, 1, 1], [], []>} : vector<32x128xbf16>, vector<128x128xbf16>, vector<32x128xf32> -> vector<32x128xf32>
    %75 = arith.addf %65, %74 : vector<32x128xf32>
    %c4_69 = arith.constant 4 : index
    %c0_70 = arith.constant 0 : index
    %76 = tpu.strided_load %arg0[%c4_69, %c0_70] {strides = array<i32: 2, 1>} : memref<72x128xf32, #tpu.memory_space<vmem>>, vector<32x128xf32>
    %77 = arith.truncf %76 : vector<32x128xf32> to vector<32x128xbf16>
    %c6_71 = arith.constant 6 : index
    %c0_72 = arith.constant 0 : index
    %c0_73 = arith.constant 0 : index
    %78 = vector.load %arg1[%c6_71, %c0_72, %c0_73] : memref<10x128x128xbf16, #tpu.memory_space<vmem>>, vector<1x128x128xbf16>
    %79 = vector.shape_cast %78 : vector<1x128x128xbf16> to vector<128x128xbf16>
    %cst_74 = arith.constant dense<0.000000e+00> : vector<32x128xf32>
    %80 = tpu.matmul %77, %79, %cst_74 {dimension_numbers = #tpu.dot_dimension_numbers<[1], [0], [0], [1], [0, 0, 1, 1], [], []>} : vector<32x128xbf16>, vector<128x128xbf16>, vector<32x128xf32> -> vector<32x128xf32>
    %81 = arith.addf %71, %80 : vector<32x128xf32>
    %c7_75 = arith.constant 7 : index
    %c0_76 = arith.constant 0 : index
    %c0_77 = arith.constant 0 : index
    %82 = vector.load %arg1[%c7_75, %c0_76, %c0_77] : memref<10x128x128xbf16, #tpu.memory_space<vmem>>, vector<1x128x128xbf16>
    %83 = vector.shape_cast %82 : vector<1x128x128xbf16> to vector<128x128xbf16>
    %cst_78 = arith.constant dense<0.000000e+00> : vector<32x128xf32>
    %84 = tpu.matmul %77, %83, %cst_78 {dimension_numbers = #tpu.dot_dimension_numbers<[1], [0], [0], [1], [0, 0, 1, 1], [], []>} : vector<32x128xbf16>, vector<128x128xbf16>, vector<32x128xf32> -> vector<32x128xf32>
    %85 = arith.addf %75, %84 : vector<32x128xf32>
    %c5_79 = arith.constant 5 : index
    %c0_80 = arith.constant 0 : index
    %86 = tpu.strided_load %arg0[%c5_79, %c0_80] {strides = array<i32: 2, 1>} : memref<72x128xf32, #tpu.memory_space<vmem>>, vector<32x128xf32>
    %87 = arith.truncf %86 : vector<32x128xf32> to vector<32x128xbf16>
    %c8_81 = arith.constant 8 : index
    %c0_82 = arith.constant 0 : index
    %c0_83 = arith.constant 0 : index
    %88 = vector.load %arg1[%c8_81, %c0_82, %c0_83] : memref<10x128x128xbf16, #tpu.memory_space<vmem>>, vector<1x128x128xbf16>
    %89 = vector.shape_cast %88 : vector<1x128x128xbf16> to vector<128x128xbf16>
    %cst_84 = arith.constant dense<0.000000e+00> : vector<32x128xf32>
    %90 = tpu.matmul %87, %89, %cst_84 {dimension_numbers = #tpu.dot_dimension_numbers<[1], [0], [0], [1], [0, 0, 1, 1], [], []>} : vector<32x128xbf16>, vector<128x128xbf16>, vector<32x128xf32> -> vector<32x128xf32>
    %91 = arith.addf %81, %90 : vector<32x128xf32>
    %c9_85 = arith.constant 9 : index
    %c0_86 = arith.constant 0 : index
    %c0_87 = arith.constant 0 : index
    %92 = vector.load %arg1[%c9_85, %c0_86, %c0_87] : memref<10x128x128xbf16, #tpu.memory_space<vmem>>, vector<1x128x128xbf16>
    %93 = vector.shape_cast %92 : vector<1x128x128xbf16> to vector<128x128xbf16>
    %cst_88 = arith.constant dense<0.000000e+00> : vector<32x128xf32>
    %94 = tpu.matmul %87, %93, %cst_88 {dimension_numbers = #tpu.dot_dimension_numbers<[1], [0], [0], [1], [0, 0, 1, 1], [], []>} : vector<32x128xbf16>, vector<128x128xbf16>, vector<32x128xf32> -> vector<32x128xf32>
    %95 = arith.addf %85, %94 : vector<32x128xf32>
    %96 = arith.maximumf %43, %47 : vector<32x128xf32>
    %97 = arith.maximumf %91, %95 : vector<32x128xf32>
    %98 = arith.maximumf %96, %97 : vector<32x128xf32>
    %c0_89 = arith.constant 0 : index
    %c0_90 = arith.constant 0 : index
    %99 = vector.load %arg2[%c0_89, %c0_90] : memref<1x128xf32, #tpu.memory_space<vmem>>, vector<1x128xf32>
    %100 = vector.broadcast %99 : vector<1x128xf32> to vector<32x128xf32>
    %101 = arith.addf %98, %100 : vector<32x128xf32>
    %cst_91 = arith.constant 0.000000e+00 : f32
    %102 = vector.broadcast %cst_91 : f32 to vector<32x128xf32>
    %103 = arith.maximumf %101, %102 : vector<32x128xf32>
    %c0_92 = arith.constant 0 : index
    %c0_93 = arith.constant 0 : index
    %104 = vector.load %arg12[%c0_92, %c0_93] : memref<32x128xf32, #tpu.memory_space<vmem>>, vector<32x128xf32>
    tpu.vector_store %arg12[%c0_92, %c0_93], %103 {strides = array<i32>} : memref<32x128xf32, #tpu.memory_space<vmem>>, vector<32x128xf32>,
    %c0_94 = arith.constant 0 : index
    %c0_95 = arith.constant 0 : index
    %105 = tpu.strided_load %arg12[%c0_94, %c0_95] {strides = array<i32: 2, 1>} : memref<32x128xf32, #tpu.memory_space<vmem>>, vector<13x128xf32>
    %106 = arith.truncf %105 : vector<13x128xf32> to vector<13x128xbf16>
    %c0_96 = arith.constant 0 : index
    %c0_97 = arith.constant 0 : index
    %c0_98 = arith.constant 0 : index
    %107 = vector.load %arg3[%c0_96, %c0_97, %c0_98] : memref<10x128x128xbf16, #tpu.memory_space<vmem>>, vector<1x128x128xbf16>
    %108 = vector.shape_cast %107 : vector<1x128x128xbf16> to vector<128x128xbf16>
    %cst_99 = arith.constant dense<0.000000e+00> : vector<13x128xf32>
    %109 = tpu.matmul %106, %108, %cst_99 {dimension_numbers = #tpu.dot_dimension_numbers<[1], [0], [0], [1], [0, 0, 1, 1], [], []>} : vector<13x128xbf16>, vector<128x128xbf16>, vector<13x128xf32> -> vector<13x128xf32>
    %c1_100 = arith.constant 1 : index
    %c0_101 = arith.constant 0 : index
    %c0_102 = arith.constant 0 : index
    %110 = vector.load %arg3[%c1_100, %c0_101, %c0_102] : memref<10x128x128xbf16, #tpu.memory_space<vmem>>, vector<1x128x128xbf16>
    %111 = vector.shape_cast %110 : vector<1x128x128xbf16> to vector<128x128xbf16>
    %cst_103 = arith.constant dense<0.000000e+00> : vector<13x128xf32>
    %112 = tpu.matmul %106, %111, %cst_103 {dimension_numbers = #tpu.dot_dimension_numbers<[1], [0], [0], [1], [0, 0, 1, 1], [], []>} : vector<13x128xbf16>, vector<128x128xbf16>, vector<13x128xf32> -> vector<13x128xf32>
    %c1_104 = arith.constant 1 : index
    %c0_105 = arith.constant 0 : index
    %113 = tpu.strided_load %arg12[%c1_104, %c0_105] {strides = array<i32: 2, 1>} : memref<32x128xf32, #tpu.memory_space<vmem>>, vector<13x128xf32>
    %114 = arith.truncf %113 : vector<13x128xf32> to vector<13x128xbf16>
    %c2_106 = arith.constant 2 : index
    %c0_107 = arith.constant 0 : index
    %c0_108 = arith.constant 0 : index
    %115 = vector.load %arg3[%c2_106, %c0_107, %c0_108] : memref<10x128x128xbf16, #tpu.memory_space<vmem>>, vector<1x128x128xbf16>
    %116 = vector.shape_cast %115 : vector<1x128x128xbf16> to vector<128x128xbf16>
    %cst_109 = arith.constant dense<0.000000e+00> : vector<13x128xf32>
    %117 = tpu.matmul %114, %116, %cst_109 {dimension_numbers = #tpu.dot_dimension_numbers<[1], [0], [0], [1], [0, 0, 1, 1], [], []>} : vector<13x128xbf16>, vector<128x128xbf16>, vector<13x128xf32> -> vector<13x128xf32>
    %118 = arith.addf %109, %117 : vector<13x128xf32>
    %c3_110 = arith.constant 3 : index
    %c0_111 = arith.constant 0 : index
    %c0_112 = arith.constant 0 : index
    %119 = vector.load %arg3[%c3_110, %c0_111, %c0_112] : memref<10x128x128xbf16, #tpu.memory_space<vmem>>, vector<1x128x128xbf16>
    %120 = vector.shape_cast %119 : vector<1x128x128xbf16> to vector<128x128xbf16>
    %cst_113 = arith.constant dense<0.000000e+00> : vector<13x128xf32>
    %121 = tpu.matmul %114, %120, %cst_113 {dimension_numbers = #tpu.dot_dimension_numbers<[1], [0], [0], [1], [0, 0, 1, 1], [], []>} : vector<13x128xbf16>, vector<128x128xbf16>, vector<13x128xf32> -> vector<13x128xf32>
    %122 = arith.addf %112, %121 : vector<13x128xf32>
    %c2_114 = arith.constant 2 : index
    %c0_115 = arith.constant 0 : index
    %123 = tpu.strided_load %arg12[%c2_114, %c0_115] {strides = array<i32: 2, 1>} : memref<32x128xf32, #tpu.memory_space<vmem>>, vector<13x128xf32>
    %124 = arith.truncf %123 : vector<13x128xf32> to vector<13x128xbf16>
    %c4_116 = arith.constant 4 : index
    %c0_117 = arith.constant 0 : index
    %c0_118 = arith.constant 0 : index
    %125 = vector.load %arg3[%c4_116, %c0_117, %c0_118] : memref<10x128x128xbf16, #tpu.memory_space<vmem>>, vector<1x128x128xbf16>
    %126 = vector.shape_cast %125 : vector<1x128x128xbf16> to vector<128x128xbf16>
    %cst_119 = arith.constant dense<0.000000e+00> : vector<13x128xf32>
    %127 = tpu.matmul %124, %126, %cst_119 {dimension_numbers = #tpu.dot_dimension_numbers<[1], [0], [0], [1], [0, 0, 1, 1], [], []>} : vector<13x128xbf16>, vector<128x128xbf16>, vector<13x128xf32> -> vector<13x128xf32>
    %128 = arith.addf %118, %127 : vector<13x128xf32>
    %c5_120 = arith.constant 5 : index
    %c0_121 = arith.constant 0 : index
    %c0_122 = arith.constant 0 : index
    %129 = vector.load %arg3[%c5_120, %c0_121, %c0_122] : memref<10x128x128xbf16, #tpu.memory_space<vmem>>, vector<1x128x128xbf16>
    %130 = vector.shape_cast %129 : vector<1x128x128xbf16> to vector<128x128xbf16>
    %cst_123 = arith.constant dense<0.000000e+00> : vector<13x128xf32>
    %131 = tpu.matmul %124, %130, %cst_123 {dimension_numbers = #tpu.dot_dimension_numbers<[1], [0], [0], [1], [0, 0, 1, 1], [], []>} : vector<13x128xbf16>, vector<128x128xbf16>, vector<13x128xf32> -> vector<13x128xf32>
    %132 = arith.addf %122, %131 : vector<13x128xf32>
    %c3_124 = arith.constant 3 : index
    %c0_125 = arith.constant 0 : index
    %133 = tpu.strided_load %arg12[%c3_124, %c0_125] {strides = array<i32: 2, 1>} : memref<32x128xf32, #tpu.memory_space<vmem>>, vector<13x128xf32>
    %134 = arith.truncf %133 : vector<13x128xf32> to vector<13x128xbf16>
    %c6_126 = arith.constant 6 : index
    %c0_127 = arith.constant 0 : index
    %c0_128 = arith.constant 0 : index
    %135 = vector.load %arg3[%c6_126, %c0_127, %c0_128] : memref<10x128x128xbf16, #tpu.memory_space<vmem>>, vector<1x128x128xbf16>
    %136 = vector.shape_cast %135 : vector<1x128x128xbf16> to vector<128x128xbf16>
    %cst_129 = arith.constant dense<0.000000e+00> : vector<13x128xf32>
    %137 = tpu.matmul %134, %136, %cst_129 {dimension_numbers = #tpu.dot_dimension_numbers<[1], [0], [0], [1], [0, 0, 1, 1], [], []>} : vector<13x128xbf16>, vector<128x128xbf16>, vector<13x128xf32> -> vector<13x128xf32>
    %138 = arith.addf %128, %137 : vector<13x128xf32>
    %c7_130 = arith.constant 7 : index
    %c0_131 = arith.constant 0 : index
    %c0_132 = arith.constant 0 : index
    %139 = vector.load %arg3[%c7_130, %c0_131, %c0_132] : memref<10x128x128xbf16, #tpu.memory_space<vmem>>, vector<1x128x128xbf16>
    %140 = vector.shape_cast %139 : vector<1x128x128xbf16> to vector<128x128xbf16>
    %cst_133 = arith.constant dense<0.000000e+00> : vector<13x128xf32>
    %141 = tpu.matmul %134, %140, %cst_133 {dimension_numbers = #tpu.dot_dimension_numbers<[1], [0], [0], [1], [0, 0, 1, 1], [], []>} : vector<13x128xbf16>, vector<128x128xbf16>, vector<13x128xf32> -> vector<13x128xf32>
    %142 = arith.addf %132, %141 : vector<13x128xf32>
    %c4_134 = arith.constant 4 : index
    %c0_135 = arith.constant 0 : index
    %143 = tpu.strided_load %arg12[%c4_134, %c0_135] {strides = array<i32: 2, 1>} : memref<32x128xf32, #tpu.memory_space<vmem>>, vector<13x128xf32>
    %144 = arith.truncf %143 : vector<13x128xf32> to vector<13x128xbf16>
    %c8_136 = arith.constant 8 : index
    %c0_137 = arith.constant 0 : index
    %c0_138 = arith.constant 0 : index
    %145 = vector.load %arg3[%c8_136, %c0_137, %c0_138] : memref<10x128x128xbf16, #tpu.memory_space<vmem>>, vector<1x128x128xbf16>
    %146 = vector.shape_cast %145 : vector<1x128x128xbf16> to vector<128x128xbf16>
    %cst_139 = arith.constant dense<0.000000e+00> : vector<13x128xf32>
    %147 = tpu.matmul %144, %146, %cst_139 {dimension_numbers = #tpu.dot_dimension_numbers<[1], [0], [0], [1], [0, 0, 1, 1], [], []>} : vector<13x128xbf16>, vector<128x128xbf16>, vector<13x128xf32> -> vector<13x128xf32>
    %148 = arith.addf %138, %147 : vector<13x128xf32>
    %c9_140 = arith.constant 9 : index
    %c0_141 = arith.constant 0 : index
    %c0_142 = arith.constant 0 : index
    %149 = vector.load %arg3[%c9_140, %c0_141, %c0_142] : memref<10x128x128xbf16, #tpu.memory_space<vmem>>, vector<1x128x128xbf16>
    %150 = vector.shape_cast %149 : vector<1x128x128xbf16> to vector<128x128xbf16>
    %cst_143 = arith.constant dense<0.000000e+00> : vector<13x128xf32>
    %151 = tpu.matmul %144, %150, %cst_143 {dimension_numbers = #tpu.dot_dimension_numbers<[1], [0], [0], [1], [0, 0, 1, 1], [], []>} : vector<13x128xbf16>, vector<128x128xbf16>, vector<13x128xf32> -> vector<13x128xf32>
    %152 = arith.addf %142, %151 : vector<13x128xf32>
    %c1_144 = arith.constant 1 : index
    %c0_145 = arith.constant 0 : index
    %153 = tpu.strided_load %arg12[%c1_144, %c0_145] {strides = array<i32: 2, 1>} : memref<32x128xf32, #tpu.memory_space<vmem>>, vector<13x128xf32>
    %154 = arith.truncf %153 : vector<13x128xf32> to vector<13x128xbf16>
    %c0_146 = arith.constant 0 : index
    %c0_147 = arith.constant 0 : index
    %c0_148 = arith.constant 0 : index
    %155 = vector.load %arg3[%c0_146, %c0_147, %c0_148] : memref<10x128x128xbf16, #tpu.memory_space<vmem>>, vector<1x128x128xbf16>
    %156 = vector.shape_cast %155 : vector<1x128x128xbf16> to vector<128x128xbf16>
    %cst_149 = arith.constant dense<0.000000e+00> : vector<13x128xf32>
    %157 = tpu.matmul %154, %156, %cst_149 {dimension_numbers = #tpu.dot_dimension_numbers<[1], [0], [0], [1], [0, 0, 1, 1], [], []>} : vector<13x128xbf16>, vector<128x128xbf16>, vector<13x128xf32> -> vector<13x128xf32>
    %c1_150 = arith.constant 1 : index
    %c0_151 = arith.constant 0 : index
    %c0_152 = arith.constant 0 : index
    %158 = vector.load %arg3[%c1_150, %c0_151, %c0_152] : memref<10x128x128xbf16, #tpu.memory_space<vmem>>, vector<1x128x128xbf16>
    %159 = vector.shape_cast %158 : vector<1x128x128xbf16> to vector<128x128xbf16>
    %cst_153 = arith.constant dense<0.000000e+00> : vector<13x128xf32>
    %160 = tpu.matmul %154, %159, %cst_153 {dimension_numbers = #tpu.dot_dimension_numbers<[1], [0], [0], [1], [0, 0, 1, 1], [], []>} : vector<13x128xbf16>, vector<128x128xbf16>, vector<13x128xf32> -> vector<13x128xf32>
    %c2_154 = arith.constant 2 : index
    %c0_155 = arith.constant 0 : index
    %161 = tpu.strided_load %arg12[%c2_154, %c0_155] {strides = array<i32: 2, 1>} : memref<32x128xf32, #tpu.memory_space<vmem>>, vector<13x128xf32>
    %162 = arith.truncf %161 : vector<13x128xf32> to vector<13x128xbf16>
    %c2_156 = arith.constant 2 : index
    %c0_157 = arith.constant 0 : index
    %c0_158 = arith.constant 0 : index
    %163 = vector.load %arg3[%c2_156, %c0_157, %c0_158] : memref<10x128x128xbf16, #tpu.memory_space<vmem>>, vector<1x128x128xbf16>
    %164 = vector.shape_cast %163 : vector<1x128x128xbf16> to vector<128x128xbf16>
    %cst_159 = arith.constant dense<0.000000e+00> : vector<13x128xf32>
    %165 = tpu.matmul %162, %164, %cst_159 {dimension_numbers = #tpu.dot_dimension_numbers<[1], [0], [0], [1], [0, 0, 1, 1], [], []>} : vector<13x128xbf16>, vector<128x128xbf16>, vector<13x128xf32> -> vector<13x128xf32>
    %166 = arith.addf %157, %165 : vector<13x128xf32>
    %c3_160 = arith.constant 3 : index
    %c0_161 = arith.constant 0 : index
    %c0_162 = arith.constant 0 : index
    %167 = vector.load %arg3[%c3_160, %c0_161, %c0_162] : memref<10x128x128xbf16, #tpu.memory_space<vmem>>, vector<1x128x128xbf16>
    %168 = vector.shape_cast %167 : vector<1x128x128xbf16> to vector<128x128xbf16>
    %cst_163 = arith.constant dense<0.000000e+00> : vector<13x128xf32>
    %169 = tpu.matmul %162, %168, %cst_163 {dimension_numbers = #tpu.dot_dimension_numbers<[1], [0], [0], [1], [0, 0, 1, 1], [], []>} : vector<13x128xbf16>, vector<128x128xbf16>, vector<13x128xf32> -> vector<13x128xf32>
    %170 = arith.addf %160, %169 : vector<13x128xf32>
    %c3_164 = arith.constant 3 : index
    %c0_165 = arith.constant 0 : index
    %171 = tpu.strided_load %arg12[%c3_164, %c0_165] {strides = array<i32: 2, 1>} : memref<32x128xf32, #tpu.memory_space<vmem>>, vector<13x128xf32>
    %172 = arith.truncf %171 : vector<13x128xf32> to vector<13x128xbf16>
    %c4_166 = arith.constant 4 : index
    %c0_167 = arith.constant 0 : index
    %c0_168 = arith.constant 0 : index
    %173 = vector.load %arg3[%c4_166, %c0_167, %c0_168] : memref<10x128x128xbf16, #tpu.memory_space<vmem>>, vector<1x128x128xbf16>
    %174 = vector.shape_cast %173 : vector<1x128x128xbf16> to vector<128x128xbf16>
    %cst_169 = arith.constant dense<0.000000e+00> : vector<13x128xf32>
    %175 = tpu.matmul %172, %174, %cst_169 {dimension_numbers = #tpu.dot_dimension_numbers<[1], [0], [0], [1], [0, 0, 1, 1], [], []>} : vector<13x128xbf16>, vector<128x128xbf16>, vector<13x128xf32> -> vector<13x128xf32>
    %176 = arith.addf %166, %175 : vector<13x128xf32>
    %c5_170 = arith.constant 5 : index
    %c0_171 = arith.constant 0 : index
    %c0_172 = arith.constant 0 : index
    %177 = vector.load %arg3[%c5_170, %c0_171, %c0_172] : memref<10x128x128xbf16, #tpu.memory_space<vmem>>, vector<1x128x128xbf16>
    %178 = vector.shape_cast %177 : vector<1x128x128xbf16> to vector<128x128xbf16>
    %cst_173 = arith.constant dense<0.000000e+00> : vector<13x128xf32>
    %179 = tpu.matmul %172, %178, %cst_173 {dimension_numbers = #tpu.dot_dimension_numbers<[1], [0], [0], [1], [0, 0, 1, 1], [], []>} : vector<13x128xbf16>, vector<128x128xbf16>, vector<13x128xf32> -> vector<13x128xf32>
    %180 = arith.addf %170, %179 : vector<13x128xf32>
    %c4_174 = arith.constant 4 : index
    %c0_175 = arith.constant 0 : index
    %181 = tpu.strided_load %arg12[%c4_174, %c0_175] {strides = array<i32: 2, 1>} : memref<32x128xf32, #tpu.memory_space<vmem>>, vector<13x128xf32>
    %182 = arith.truncf %181 : vector<13x128xf32> to vector<13x128xbf16>
    %c6_176 = arith.constant 6 : index
    %c0_177 = arith.constant 0 : index
    %c0_178 = arith.constant 0 : index
    %183 = vector.load %arg3[%c6_176, %c0_177, %c0_178] : memref<10x128x128xbf16, #tpu.memory_space<vmem>>, vector<1x128x128xbf16>
    %184 = vector.shape_cast %183 : vector<1x128x128xbf16> to vector<128x128xbf16>
    %cst_179 = arith.constant dense<0.000000e+00> : vector<13x128xf32>
    %185 = tpu.matmul %182, %184, %cst_179 {dimension_numbers = #tpu.dot_dimension_numbers<[1], [0], [0], [1], [0, 0, 1, 1], [], []>} : vector<13x128xbf16>, vector<128x128xbf16>, vector<13x128xf32> -> vector<13x128xf32>
    %186 = arith.addf %176, %185 : vector<13x128xf32>
    %c7_180 = arith.constant 7 : index
    %c0_181 = arith.constant 0 : index
    %c0_182 = arith.constant 0 : index
    %187 = vector.load %arg3[%c7_180, %c0_181, %c0_182] : memref<10x128x128xbf16, #tpu.memory_space<vmem>>, vector<1x128x128xbf16>
    %188 = vector.shape_cast %187 : vector<1x128x128xbf16> to vector<128x128xbf16>
    %cst_183 = arith.constant dense<0.000000e+00> : vector<13x128xf32>
    %189 = tpu.matmul %182, %188, %cst_183 {dimension_numbers = #tpu.dot_dimension_numbers<[1], [0], [0], [1], [0, 0, 1, 1], [], []>} : vector<13x128xbf16>, vector<128x128xbf16>, vector<13x128xf32> -> vector<13x128xf32>
    %190 = arith.addf %180, %189 : vector<13x128xf32>
    %c5_184 = arith.constant 5 : index
    %c0_185 = arith.constant 0 : index
    %191 = tpu.strided_load %arg12[%c5_184, %c0_185] {strides = array<i32: 2, 1>} : memref<32x128xf32, #tpu.memory_space<vmem>>, vector<13x128xf32>
    %192 = arith.truncf %191 : vector<13x128xf32> to vector<13x128xbf16>
    %c8_186 = arith.constant 8 : index
    %c0_187 = arith.constant 0 : index
    %c0_188 = arith.constant 0 : index
    %193 = vector.load %arg3[%c8_186, %c0_187, %c0_188] : memref<10x128x128xbf16, #tpu.memory_space<vmem>>, vector<1x128x128xbf16>
    %194 = vector.shape_cast %193 : vector<1x128x128xbf16> to vector<128x128xbf16>
    %cst_189 = arith.constant dense<0.000000e+00> : vector<13x128xf32>
    %195 = tpu.matmul %192, %194, %cst_189 {dimension_numbers = #tpu.dot_dimension_numbers<[1], [0], [0], [1], [0, 0, 1, 1], [], []>} : vector<13x128xbf16>, vector<128x128xbf16>, vector<13x128xf32> -> vector<13x128xf32>
    %196 = arith.addf %186, %195 : vector<13x128xf32>
    %c9_190 = arith.constant 9 : index
    %c0_191 = arith.constant 0 : index
    %c0_192 = arith.constant 0 : index
    %197 = vector.load %arg3[%c9_190, %c0_191, %c0_192] : memref<10x128x128xbf16, #tpu.memory_space<vmem>>, vector<1x128x128xbf16>
    %198 = vector.shape_cast %197 : vector<1x128x128xbf16> to vector<128x128xbf16>
    %cst_193 = arith.constant dense<0.000000e+00> : vector<13x128xf32>
    %199 = tpu.matmul %192, %198, %cst_193 {dimension_numbers = #tpu.dot_dimension_numbers<[1], [0], [0], [1], [0, 0, 1, 1], [], []>} : vector<13x128xbf16>, vector<128x128xbf16>, vector<13x128xf32> -> vector<13x128xf32>
    %200 = arith.addf %190, %199 : vector<13x128xf32>
    %201 = arith.maximumf %148, %152 : vector<13x128xf32>
    %202 = arith.maximumf %196, %200 : vector<13x128xf32>
    %203 = arith.maximumf %201, %202 : vector<13x128xf32>
    %c0_194 = arith.constant 0 : index
    %c0_195 = arith.constant 0 : index
    %204 = vector.load %arg4[%c0_194, %c0_195] : memref<1x128xf32, #tpu.memory_space<vmem>>, vector<1x128xf32>
    %205 = vector.broadcast %204 : vector<1x128xf32> to vector<13x128xf32>
    %206 = arith.addf %203, %205 : vector<13x128xf32>
    %cst_196 = arith.constant 0.000000e+00 : f32
    %207 = vector.broadcast %cst_196 : f32 to vector<13x128xf32>
    %208 = arith.maximumf %206, %207 : vector<13x128xf32>
    %c0_197 = arith.constant 0 : index
    %c0_198 = arith.constant 0 : index
    %209 = vector.load %arg13[%c0_197, %c0_198] : memref<16x128xf32, #tpu.memory_space<vmem>>, vector<13x128xf32>
    tpu.vector_store %arg13[%c0_197, %c0_198], %208 {strides = array<i32>} : memref<16x128xf32, #tpu.memory_space<vmem>>, vector<13x128xf32>,
    %c0_199 = arith.constant 0 : index
    %c0_200 = arith.constant 0 : index
    %210 = tpu.strided_load %arg13[%c0_199, %c0_200] {strides = array<i32: 8, 1>} : memref<16x128xf32, #tpu.memory_space<vmem>>, vector<2x128xf32>
    %211 = arith.truncf %210 : vector<2x128xf32> to vector<2x128xbf16>
    %c0_201 = arith.constant 0 : index
    %c0_202 = arith.constant 0 : index
    %c0_203 = arith.constant 0 : index
    %212 = vector.load %arg5[%c0_201, %c0_202, %c0_203] : memref<5x128x128xbf16, #tpu.memory_space<vmem>>, vector<1x128x128xbf16>
    %213 = vector.shape_cast %212 : vector<1x128x128xbf16> to vector<128x128xbf16>
    %cst_204 = arith.constant dense<0.000000e+00> : vector<2x128xf32>
    %214 = tpu.matmul %211, %213, %cst_204 {dimension_numbers = #tpu.dot_dimension_numbers<[1], [0], [0], [1], [0, 0, 1, 1], [], []>} : vector<2x128xbf16>, vector<128x128xbf16>, vector<2x128xf32> -> vector<2x128xf32>
    %c1_205 = arith.constant 1 : index
    %c0_206 = arith.constant 0 : index
    %215 = tpu.strided_load %arg13[%c1_205, %c0_206] {strides = array<i32: 8, 1>} : memref<16x128xf32, #tpu.memory_space<vmem>>, vector<2x128xf32>
    %216 = arith.truncf %215 : vector<2x128xf32> to vector<2x128xbf16>
    %c1_207 = arith.constant 1 : index
    %c0_208 = arith.constant 0 : index
    %c0_209 = arith.constant 0 : index
    %217 = vector.load %arg5[%c1_207, %c0_208, %c0_209] : memref<5x128x128xbf16, #tpu.memory_space<vmem>>, vector<1x128x128xbf16>
    %218 = vector.shape_cast %217 : vector<1x128x128xbf16> to vector<128x128xbf16>
    %cst_210 = arith.constant dense<0.000000e+00> : vector<2x128xf32>
    %219 = tpu.matmul %216, %218, %cst_210 {dimension_numbers = #tpu.dot_dimension_numbers<[1], [0], [0], [1], [0, 0, 1, 1], [], []>} : vector<2x128xbf16>, vector<128x128xbf16>, vector<2x128xf32> -> vector<2x128xf32>
    %220 = arith.addf %214, %219 : vector<2x128xf32>
    %c2_211 = arith.constant 2 : index
    %c0_212 = arith.constant 0 : index
    %221 = tpu.strided_load %arg13[%c2_211, %c0_212] {strides = array<i32: 8, 1>} : memref<16x128xf32, #tpu.memory_space<vmem>>, vector<2x128xf32>
    %222 = arith.truncf %221 : vector<2x128xf32> to vector<2x128xbf16>
    %c2_213 = arith.constant 2 : index
    %c0_214 = arith.constant 0 : index
    %c0_215 = arith.constant 0 : index
    %223 = vector.load %arg5[%c2_213, %c0_214, %c0_215] : memref<5x128x128xbf16, #tpu.memory_space<vmem>>, vector<1x128x128xbf16>
    %224 = vector.shape_cast %223 : vector<1x128x128xbf16> to vector<128x128xbf16>
    %cst_216 = arith.constant dense<0.000000e+00> : vector<2x128xf32>
    %225 = tpu.matmul %222, %224, %cst_216 {dimension_numbers = #tpu.dot_dimension_numbers<[1], [0], [0], [1], [0, 0, 1, 1], [], []>} : vector<2x128xbf16>, vector<128x128xbf16>, vector<2x128xf32> -> vector<2x128xf32>
    %226 = arith.addf %220, %225 : vector<2x128xf32>
    %c3_217 = arith.constant 3 : index
    %c0_218 = arith.constant 0 : index
    %227 = tpu.strided_load %arg13[%c3_217, %c0_218] {strides = array<i32: 8, 1>} : memref<16x128xf32, #tpu.memory_space<vmem>>, vector<2x128xf32>
    %228 = arith.truncf %227 : vector<2x128xf32> to vector<2x128xbf16>
    %c3_219 = arith.constant 3 : index
    %c0_220 = arith.constant 0 : index
    %c0_221 = arith.constant 0 : index
    %229 = vector.load %arg5[%c3_219, %c0_220, %c0_221] : memref<5x128x128xbf16, #tpu.memory_space<vmem>>, vector<1x128x128xbf16>
    %230 = vector.shape_cast %229 : vector<1x128x128xbf16> to vector<128x128xbf16>
    %cst_222 = arith.constant dense<0.000000e+00> : vector<2x128xf32>
    %231 = tpu.matmul %228, %230, %cst_222 {dimension_numbers = #tpu.dot_dimension_numbers<[1], [0], [0], [1], [0, 0, 1, 1], [], []>} : vector<2x128xbf16>, vector<128x128xbf16>, vector<2x128xf32> -> vector<2x128xf32>
    %232 = arith.addf %226, %231 : vector<2x128xf32>
    %c4_223 = arith.constant 4 : index
    %c0_224 = arith.constant 0 : index
    %233 = tpu.strided_load %arg13[%c4_223, %c0_224] {strides = array<i32: 8, 1>} : memref<16x128xf32, #tpu.memory_space<vmem>>, vector<2x128xf32>
    %234 = arith.truncf %233 : vector<2x128xf32> to vector<2x128xbf16>
    %c4_225 = arith.constant 4 : index
    %c0_226 = arith.constant 0 : index
    %c0_227 = arith.constant 0 : index
    %235 = vector.load %arg5[%c4_225, %c0_226, %c0_227] : memref<5x128x128xbf16, #tpu.memory_space<vmem>>, vector<1x128x128xbf16>
    %236 = vector.shape_cast %235 : vector<1x128x128xbf16> to vector<128x128xbf16>
    %cst_228 = arith.constant dense<0.000000e+00> : vector<2x128xf32>
    %237 = tpu.matmul %234, %236, %cst_228 {dimension_numbers = #tpu.dot_dimension_numbers<[1], [0], [0], [1], [0, 0, 1, 1], [], []>} : vector<2x128xbf16>, vector<128x128xbf16>, vector<2x128xf32> -> vector<2x128xf32>
    %238 = arith.addf %232, %237 : vector<2x128xf32>
    %c0_229 = arith.constant 0 : index
    %c0_230 = arith.constant 0 : index
    %239 = vector.load %arg6[%c0_229, %c0_230] : memref<1x128xf32, #tpu.memory_space<vmem>>, vector<1x128xf32>
    %240 = vector.broadcast %239 : vector<1x128xf32> to vector<2x128xf32>
    %241 = arith.addf %238, %240 : vector<2x128xf32>
    %cst_231 = arith.constant 0.000000e+00 : f32
    %242 = vector.broadcast %cst_231 : f32 to vector<2x128xf32>
    %243 = arith.maximumf %241, %242 : vector<2x128xf32>
    %244 = arith.truncf %243 : vector<2x128xf32> to vector<2x128xbf16>
    %c0_232 = arith.constant 0 : index
    %c0_233 = arith.constant 0 : index
    %245 = vector.load %arg7[%c0_232, %c0_233] : memref<128x128xbf16, #tpu.memory_space<vmem>>, vector<128x128xbf16>
    %cst_234 = arith.constant dense<0.000000e+00> : vector<2x128xf32>
    %246 = tpu.matmul %244, %245, %cst_234 {dimension_numbers = #tpu.dot_dimension_numbers<[1], [0], [0], [1], [0, 0, 1, 1], [], []>} : vector<2x128xbf16>, vector<128x128xbf16>, vector<2x128xf32> -> vector<2x128xf32>
    %c0_235 = arith.constant 0 : index
    %c0_236 = arith.constant 0 : index
    %247 = vector.load %arg8[%c0_235, %c0_236] : memref<1x128xf32, #tpu.memory_space<vmem>>, vector<1x128xf32>
    %248 = vector.broadcast %247 : vector<1x128xf32> to vector<2x128xf32>
    %249 = arith.addf %246, %248 : vector<2x128xf32>
    %cst_237 = arith.constant 0.000000e+00 : f32
    %250 = vector.broadcast %cst_237 : f32 to vector<2x128xf32>
    %251 = arith.maximumf %249, %250 : vector<2x128xf32>
    %252 = arith.truncf %251 : vector<2x128xf32> to vector<2x128xbf16>
    %c0_238 = arith.constant 0 : index
    %c0_239 = arith.constant 0 : index
    %253 = vector.load %arg9[%c0_238, %c0_239] : memref<128x10xbf16, #tpu.memory_space<vmem>>, vector<128x10xbf16>
    %cst_240 = arith.constant dense<0.000000e+00> : vector<2x10xf32>
    %254 = tpu.matmul %252, %253, %cst_240 {dimension_numbers = #tpu.dot_dimension_numbers<[1], [0], [0], [1], [0, 0, 1, 1], [], []>} : vector<2x128xbf16>, vector<128x10xbf16>, vector<2x10xf32> -> vector<2x10xf32>
    %c0_241 = arith.constant 0 : index
    %c0_242 = arith.constant 0 : index
    %255 = vector.load %arg10[%c0_241, %c0_242] : memref<1x10xf32, #tpu.memory_space<vmem>>, vector<1x10xf32>
    %256 = vector.broadcast %255 : vector<1x10xf32> to vector<2x10xf32>
    %257 = arith.addf %254, %256 : vector<2x10xf32>
    %c0_243 = arith.constant 0 : index
    %c0_244 = arith.constant 0 : index
    %258 = vector.load %arg11[%c0_243, %c0_244] : memref<2x10xf32, #tpu.memory_space<vmem>>, vector<2x10xf32>
    tpu.vector_store %arg11[%c0_243, %c0_244], %257 {strides = array<i32>} : memref<2x10xf32, #tpu.memory_space<vmem>>, vector<2x10xf32>,
    return
  }
}

</mosaic_0001>

<bundles_post_ra>
// kernel: lenet_forward.1
= control target key start
LH: loop header
LB: loop body
LE: loop exit
PB: predicated region body
PF: predicated region fallthrough
CT: control target
= control target key end

     0   :  { %16 = vsyncpa [#allocation5], 0  ;;  %s5669_s0 = inlined_call_operand.vmem [shape: f32[72,128], index: 0, kind: input, shape index: {}]   ;;  %s5670_s1 = inlined_call_operand.vmem [shape: bf16[10,128,128], index: 1, kind: input, shape index: {}]   ;;  %s5671_s2 = inlined_call_operand.vmem [shape: f32[1,128], index: 2, kind: input, shape index: {}]   ;;  %s5672_s3 = inlined_call_operand.hbm [shape: bf16[10,128,128], index: 3, kind: input, shape index: {}]   ;;  %s5673_s4 = inlined_call_operand.vmem [shape: f32[1,128], index: 4, kind: input, shape index: {}]   ;;  %s5674_s5 = inlined_call_operand.vmem [shape: bf16[5,128,128], index: 5, kind: input, shape index: {}]   ;;  %s5675_s6 = inlined_call_operand.vmem [shape: f32[1,128], index: 6, kind: input, shape index: {}]   ;;  %s5676_s7 = inlined_call_operand.vmem [shape: bf16[128,128], index: 7, kind: input, shape index: {}]   ;;  %s5677_s8 = inlined_call_operand.vmem [shape: f32[1,128], index: 8, kind: input, shape index: {}]   ;;  %s5678_s9 = inlined_call_operand.vmem [shape: bf16[128,10], index: 9, kind: input, shape index: {}]   ;;  %s5679_s10 = inlined_call_operand.vmem [shape: f32[1,10], index: 10, kind: input, shape index: {}]   ;;  %s5680_s11 = inlined_call_operand.hbm [shape: f32[2,10], index: 11, kind: output, shape index: {}]  }
   0x1   :  { %17 = vsyncpa [#allocation6], 0  ;;  %s28_s19 = sshll.u32 %s5672_s3, 4  ;;  %s4185_s20 = smov [#allocation4]   ;;  %s29_s19 = int_to_ptr.hbm [resolvable:$true] %s28_s19 }
   0x2   :  { %s30_s21 = sshll.u32 %s4185_s20, 4  ;;  %s4186_s22 = smov 64   ;;  %s31_s21 = int_to_ptr.vmem [resolvable:$true] %s30_s21 }
   0x3   :  { %s4187_s23 = smov 4  }
   0x4   :  { %36 = dma.hbm_to_vmem [thread:$0]  %s29_s19, 10240, %s31_s21, [#allocation5], %s4186_s22, %s4186_s22, %s4187_s23  }
   0x5   :  { %4181 = dma.done.wait [#allocation5], 10240  }
   0x6   :  { %4182 = vsyncadd [#allocation5], 4294957056  ;;  %v4255_v0 = vld [vmem:[%s5670_s1 + $0xb8] sm:$0xff]  ;;  %v4277_v4 = vld [vmem:[%s5670_s1 + $0xb0] sm:$0xff]  ;;  %s4188_s30 = smov [#allocation7]   ;;  %vm2794_vm0 = vcmask 74752  }
   0x7   :  { %v4260_v1 = vld [vmem:[%s5670_s1 + $0x38] sm:$0xff]  ;;  %172 = vmatpush.bf16.msra.mxu0 %v4255_v0  ;;  %v4282_v5 = vld [vmem:[%s5670_s1 + $0x30] sm:$0xff]  ;;  %v4301_v8 = vld [vmem:[%s5670_s1 + $0xa8] sm:$0xff] }
   0x8   :  { %v4265_v2 = vld [vmem:[%s5670_s1 + $0xf8] sm:$0xff]  ;;  %239 = vmatpush.bf16.msra.mxu1 %v4260_v1  ;;  %v4289_v6 = vld [vmem:[%s5670_s1 + $0xf0] sm:$0xff]  ;;  %v4306_v9 = vld [vmem:[%s5670_s1 + $0x28] sm:$0xff] }
   0x9   :  { %v4270_v3 = vld [vmem:[%s5670_s1 + $0x78] sm:$0xff]  ;;  %323 = vmatpush.bf16.msra.mxu2 %v4265_v2  ;;  %v4294_v7 = vld [vmem:[%s5670_s1 + $0x70] sm:$0xff]  ;;  %v4313_v10 = vld [vmem:[%s5670_s1 + $0xe8] sm:$0xff] }
   0xa   :  { %390 = vmatpush.bf16.msra.mxu3 %v4270_v3  ;;  %v4318_v11 = vld [vmem:[%s5670_s1 + $0x68] sm:$0xff]  ;;  %v4325_v12 = vld [vmem:[%s5670_s1 + $0xa0] sm:$0xff]  ;;  %v4349_v16 = vld [vmem:[%s5670_s1 + $0x98] sm:$0xff] }
   0xb   :  { %173 = vmatpush.bf16.msra.mxu0 %v4277_v4  ;;  %v4330_v13 = vld [vmem:[%s5670_s1 + $0x20] sm:$0xff]  ;;  %v4354_v17 = vld [vmem:[%s5670_s1 + $0x18] sm:$0xff]  ;;  %v4373_v20 = vld [vmem:[%s5670_s1 + $0x90] sm:$0xff] }
   0xc   :  { %240 = vmatpush.bf16.msra.mxu1 %v4282_v5  ;;  %v4337_v14 = vld [vmem:[%s5670_s1 + $0xe0] sm:$0xff]  ;;  %v4361_v18 = vld [vmem:[%s5670_s1 + $0xd8] sm:$0xff]  ;;  %v4378_v21 = vld [vmem:[%s5670_s1 + $0x10] sm:$0xff] }
   0xd   :  { %324 = vmatpush.bf16.msra.mxu2 %v4289_v6  ;;  %v4342_v15 = vld [vmem:[%s5670_s1 + $0x60] sm:$0xff]  ;;  %v4366_v19 = vld [vmem:[%s5670_s1 + $0x58] sm:$0xff]  ;;  %v4385_v22 = vld [vmem:[%s5670_s1 + $0xd0] sm:$0xff] }
   0xe   :  { %391 = vmatpush.bf16.msra.mxu3 %v4294_v7  ;;  %v4390_v23 = vld [vmem:[%s5670_s1 + $0x50] sm:$0xff]  ;;  %v4395_v24 = vld [vmem:[%s5670_s1 + $0x88] sm:$0xff]  ;;  %v4419_v28 = vld [vmem:[%s5670_s1 + $0x80] sm:$0xff] }
   0xf   :  { %174 = vmatpush.bf16.msra.mxu0 %v4301_v8  ;;  %v4400_v25 = vld [vmem:[%s5670_s1 + $0x8] sm:$0xff]  ;;  %v4424_v29 = vld [vmem:[%s5670_s1] sm:$0xff]  ;;  %v2833_v31 = vld [vmem:[%s5669_s0 + $0x11] ss:$2 sm:$0xff] }
  0x10   :  { %241 = vmatpush.bf16.msra.mxu1 %v4306_v9  ;;  %v4409_v26 = vld [vmem:[%s5670_s1 + $0xc8] sm:$0xff]  ;;  %v2813_v33 = vld [vmem:[%s5669_s0 + $0x10] ss:$2 sm:$0xff]  ;;  %v4445_v34 = vld [vmem:[%s5670_s1 + $0xc0] sm:$0xff] }
  0x11   :  { %325 = vmatpush.bf16.msra.mxu2 %v4313_v10  ;;  %v4414_v27 = vld [vmem:[%s5670_s1 + $0x48] sm:$0xff]  ;;  %v4450_v35 = vld [vmem:[%s5670_s1 + $0x40] sm:$0xff]  ;;  %v4455_v36 = vld [vmem:[%s5670_s1 + $0x138] sm:$0xff] }
  0x12   :  { %392 = vmatpush.bf16.msra.mxu3 %v4318_v11  ;;  %v2832_v30 = vld [vmem:[%s5669_s0 + $0x1] ss:$2 sm:$0xff]  ;;  %v55_v32 = vld [vmem:[%s5669_s0] ss:$2 sm:$0xff]  ;;  %v4460_v37 = vld [vmem:[%s5670_s1 + $0x178] sm:$0xff] }
  0x13   :  { %175 = vmatpush.bf16.msra.mxu0 %v4325_v12  ;;  %v4462_v38 = vpack.c.bf16 %v2833_v31, %v2832_v30  ;;  %v62_v39 = vpack.c.bf16 %v2813_v33, %v55_v32  ;;  %v4471_v40 = vld [vmem:[%s5670_s1 + $0x1b8] sm:$0xff]  ;;  %v4483_v42 = vld [vmem:[%s5670_s1 + $0x130] sm:$0xff]  ;;  %v4509_v46 = vld [vmem:[%s5670_s1 + $0x128] sm:$0xff] }
  0x14   :  { %242 = vmatpush.bf16.msra.mxu1 %v4330_v13  ;;  %v4476_v41 = vld [vmem:[%s5670_s1 + $0x1f8] sm:$0xff]  ;;  %v4488_v43 = vld [vmem:[%s5670_s1 + $0x170] sm:$0xff]  ;;  %v4514_v47 = vld [vmem:[%s5670_s1 + $0x168] sm:$0xff] }
  0x15   :  { %326 = vmatpush.bf16.msra.mxu2 %v4337_v14  ;;  %v4497_v44 = vld [vmem:[%s5670_s1 + $0x1b0] sm:$0xff]  ;;  %v4521_v48 = vld [vmem:[%s5670_s1 + $0x1a8] sm:$0xff]  ;;  %v4533_v50 = vld [vmem:[%s5670_s1 + $0x120] sm:$0xff] }
  0x16   :  { %393 = vmatpush.bf16.msra.mxu3 %v4342_v15  ;;  %v4502_v45 = vld [vmem:[%s5670_s1 + $0x1f0] sm:$0xff]  ;;  %5734 = vst [vmem:[#allocation11_spill] sm:$0xff] %v4521_v48  ;;  %v4526_v49 = vld [vmem:[%s5670_s1 + $0x1e8] sm:$0xff]  ;;  %v4538_v51 = vld [vmem:[%s5670_s1 + $0x160] sm:$0xff] }
  0x17   :  { %176 = vmatpush.bf16.msra.mxu0 %v4349_v16  ;;  %5733 = vst [vmem:[#allocation10_spill] sm:$0xff] %v4502_v45  ;;  %v2834_v52 = vld [vmem:[%s5669_s0 + $0x21] ss:$2 sm:$0xff]  ;;  %v2835_v53 = vld [vmem:[%s5669_s0 + $0x31] ss:$2 sm:$0xff] }
  0x18   :  { %243 = vmatpush.bf16.msra.mxu1 %v4354_v17  ;;  %5735 = vst [vmem:[#allocation12_spill] sm:$0xff] %v4526_v49  ;;  %v2814_v54 = vld [vmem:[%s5669_s0 + $0x20] ss:$2 sm:$0xff]  ;;  %v2815_v55 = vld [vmem:[%s5669_s0 + $0x30] ss:$2 sm:$0xff]  ;;  %v4576_v60 = vpack.c.bf16 %v2835_v53, %v2834_v52 }
  0x19   :  { %327 = vmatpush.bf16.msra.mxu2 %v4361_v18  ;;  %v4557_v56 = vld [vmem:[%s5670_s1 + $0x1a0] sm:$0xff]  ;;  %v4569_v58 = vld [vmem:[%s5670_s1 + $0x118] sm:$0xff]  ;;  %v63_v61 = vpack.c.bf16 %v2815_v55, %v2814_v54  ;;  %v4595_v30 = vld [vmem:[%s5670_s1 + $0x110] sm:$0xff] }
  0x1a   :  { %394 = vmatpush.bf16.msra.mxu3 %v4366_v19  ;;  %5736 = vst [vmem:[#allocation13_spill] sm:$0xff] %v4557_v56  ;;  %v4562_v57 = vld [vmem:[%s5670_s1 + $0x1e0] sm:$0xff]  ;;  %v4574_v59 = vld [vmem:[%s5670_s1 + $0x158] sm:$0xff]  ;;  %v4600_v31 = vld [vmem:[%s5670_s1 + $0x150] sm:$0xff] }
  0x1b   :  { %177 = vmatpush.bf16.msra.mxu0 %v4373_v20  ;;  %5737 = vst [vmem:[#allocation14_spill] sm:$0xff] %v4562_v57  ;;  %v4583_v62 = vld [vmem:[%s5670_s1 + $0x198] sm:$0xff]  ;;  %v4609_v32 = vld [vmem:[%s5670_s1 + $0x190] sm:$0xff]  ;;  %v4626_v52 = vld [vmem:[%s5670_s1 + $0x148] sm:$0xff] }
  0x1c   :  { %244 = vmatpush.bf16.msra.mxu1 %v4378_v21  ;;  %5738 = vst [vmem:[#allocation15_spill] sm:$0xff] %v4583_v62  ;;  %v4588_v63 = vld [vmem:[%s5670_s1 + $0x1d8] sm:$0xff]  ;;  %v4614_v33 = vld [vmem:[%s5670_s1 + $0x1d0] sm:$0xff]  ;;  %v4633_v53 = vld [vmem:[%s5670_s1 + $0x188] sm:$0xff] }
  0x1d   :  { %328 = vmatpush.bf16.msra.mxu2 %v4385_v22  ;;  %5739 = vst [vmem:[#allocation16_spill] sm:$0xff] %v4588_v63  ;;  %v4638_v54 = vld [vmem:[%s5670_s1 + $0x1c8] sm:$0xff]  ;;  %v4645_v55 = vld [vmem:[%s5670_s1 + $0x100] sm:$0xff] }
  0x1e   :  { %395 = vmatpush.bf16.msra.mxu3 %v4390_v23  ;;  %5740 = vst [vmem:[#allocation17_spill] sm:$0xff] %v4609_v32 }
  0x1f   :  { %178 = vmatpush.bf16.msra.mxu0 %v4395_v24  ;;  %5741 = vst [vmem:[#allocation18_spill] sm:$0xff] %v4614_v33 }
  0x20   :  { %245 = vmatpush.bf16.msra.mxu1 %v4400_v25  ;;  %5742 = vst [vmem:[#allocation19_spill] sm:$0xff] %v4633_v53 }
  0x21   :  { %329 = vmatpush.bf16.msra.mxu2 %v4409_v26  ;;  %5743 = vst [vmem:[#allocation20_spill] sm:$0xff] %v4638_v54 }
  0x22   :  { %396 = vmatpush.bf16.msra.mxu3 %v4414_v27 }
  0x23   :  { %179 = vmatpush.bf16.msra.mxu0 %v4419_v28 }
  0x24   :  { %246 = vmatpush.bf16.msra.mxu1 %v4424_v29 }
  0x25   :  { %330 = vmatpush.bf16.msra.mxu2 %v4445_v34 }
  0x26   :  { %397 = vmatpush.bf16.msra.mxu3 %v4450_v35  ;;  %180 = vmatmul.bf16.vlgmr.msra.gmra.mxu0 %v4462_v38 }
  0x27   :  { %484 = vmatpush.bf16.msrb.mxu0 %v4455_v36  ;;  %247 = vmatmul.bf16.vlgmr.msra.gmra.mxu1 %v62_v39 }
  0x28   :  { %572 = vmatpush.bf16.msrb.mxu1 %v4460_v37  ;;  %331 = vmatmul.bf16.vlgmr.msra.gmra.mxu2 %v4462_v38 }
  0x29   :  { %398 = vmatmul.bf16.vlgmr.msra.gmra.mxu3 %v62_v39  ;;  %670 = vmatpush.bf16.msrb.mxu2 %v4471_v40  ;;  %v4621_v39 = vld [vmem:[%s5670_s1 + $0x108] sm:$0xff] }
  0x2a   :  { %758 = vmatpush.bf16.msrb.mxu3 %v4476_v41 }
  0x2b   :  { %485 = vmatpush.bf16.msrb.mxu0 %v4483_v42 }
  0x2c   :  { %573 = vmatpush.bf16.msrb.mxu1 %v4488_v43 }
  0x2d   :  { %671 = vmatpush.bf16.msrb.mxu2 %v4497_v44 }
  0x2e   :  { %759 = vmatpush.bf16.msrb.mxu3 %v4502_v45  ;;  %v4699_v45 = vld [vmem:[%s5670_s1 + $0x230] sm:$0xff] }
  0x2f   :  { %486 = vmatpush.bf16.msrb.mxu0 %v4509_v46 }
  0x30   :  { %574 = vmatpush.bf16.msrb.mxu1 %v4514_v47 }
  0x31   :  { %672 = vmatpush.bf16.msrb.mxu2 %v4521_v48  ;;  %v3097_v48 = vld [vmem:[%s5669_s0 + $0x13] ss:$2 sm:$0xff] }
  0x32   :  { %760 = vmatpush.bf16.msrb.mxu3 %v4526_v49  ;;  %v3096_v49 = vld [vmem:[%s5669_s0 + $0x3] ss:$2 sm:$0xff] }
  0x33   :  { %487 = vmatpush.bf16.msrb.mxu0 %v4533_v50 }
  0x34   :  { %575 = vmatpush.bf16.msrb.mxu1 %v4538_v51 }
  0x35   :  { %673 = vmatpush.bf16.msrb.mxu2 %v4557_v56  ;;  %v4678_v56 = vld [vmem:[%s5670_s1 + $0x1c0] sm:$0xff] }
  0x36   :  { %761 = vmatpush.bf16.msrb.mxu3 %v4562_v57  ;;  %185 = vmatmul.bf16.gmra.mxu0 %v4576_v60  ;;  %v2997_v57 = vld [vmem:[%s5669_s0 + $0x12] ss:$2 sm:$0xff]  ;;  %5745 = vst [vmem:[#allocation22_spill] sm:$0xff] %v4678_v56 }
  0x37   :  { %488 = vmatpush.bf16.msrb.mxu0 %v4569_v58  ;;  %252 = vmatmul.bf16.gmra.mxu1 %v63_v61 }
  0x38   :  { %576 = vmatpush.bf16.msrb.mxu1 %v4574_v59  ;;  %336 = vmatmul.bf16.gmra.mxu2 %v4576_v60 }
  0x39   :  { %403 = vmatmul.bf16.gmra.mxu3 %v63_v61  ;;  %674 = vmatpush.bf16.msrb.mxu2 %v4583_v62  ;;  %v4650_v61 = vld [vmem:[%s5670_s1 + $0x140] sm:$0xff] }
  0x3a   :  { %762 = vmatpush.bf16.msrb.mxu3 %v4588_v63  ;;  %v4665_v63 = vld [vmem:[%s5670_s1 + $0x180] sm:$0xff] }
  0x3b   :  { %489 = vmatpush.bf16.msrb.mxu0 %v4595_v30  ;;  %5744 = vst [vmem:[#allocation21_spill] sm:$0xff] %v4665_v63  ;;  %v2996_v62 = vld [vmem:[%s5669_s0 + $0x2] ss:$2 sm:$0xff] }
  0x3c   :  { %577 = vmatpush.bf16.msrb.mxu1 %v4600_v31 }
  0x3d   :  { %675 = vmatpush.bf16.msrb.mxu2 %v4609_v32  ;;  %v4660_v32 = vld [vmem:[%s5670_s1 + $0x278] sm:$0xff] }
  0x3e   :  { %763 = vmatpush.bf16.msrb.mxu3 %v4614_v33  ;;  %v4655_v33 = vld [vmem:[%s5670_s1 + $0x238] sm:$0xff] }
  0x3f   :  { %490 = vmatpush.bf16.msrb.mxu0 %v4621_v39 }
  0x40   :  { %578 = vmatpush.bf16.msrb.mxu1 %v4626_v52 }
  0x41   :  { %676 = vmatpush.bf16.msrb.mxu2 %v4633_v53  ;;  %v4688_v53 = vpack.c.bf16 %v2997_v57, %v2996_v62  ;;  %v4704_v57 = vld [vmem:[%s5670_s1 + $0x270] sm:$0xff] }
  0x42   :  { %764 = vmatpush.bf16.msrb.mxu3 %v4638_v54  ;;  %v4692_v54 = vpack.c.bf16 %v3097_v48, %v3096_v49  ;;  %v4717_v48 = vld [vmem:[%s5670_s1 + $0x228] sm:$0xff]  ;;  %v4736_v49 = vld [vmem:[%s5670_s1 + $0x260] sm:$0xff] }
  0x43   :  { %491 = vmatpush.bf16.msrb.mxu0 %v4645_v55  ;;  %5748 = vst [vmem:[#allocation25_spill] sm:$0xff] %v4736_v49  ;;  %v3098_v62 = vld [vmem:[%s5669_s0 + $0x23] ss:$2 sm:$0xff] }
  0x44   :  { %579 = vmatpush.bf16.msrb.mxu1 %v4650_v61 }
  0x45   :  { %677 = vmatpush.bf16.msrb.mxu2 %v4665_v63 }
  0x46   :  { %765 = vmatpush.bf16.msrb.mxu3 %v4678_v56  ;;  %492 = vmatmul.bf16.vlgmr.msrb.gmra.mxu0 %v4688_v53  ;;  %v4762_v56 = vld [vmem:[%s5670_s1 + $0x258] sm:$0xff] }
  0x47   :  { %856 = vmatpush.bf16.msra.mxu0 %v4655_v33  ;;  %580 = vmatmul.bf16.vlgmr.msrb.gmra.mxu1 %v4688_v53 }
  0x48   :  { %944 = vmatpush.bf16.msra.mxu1 %v4660_v32  ;;  %678 = vmatmul.bf16.vlgmr.msrb.gmra.mxu2 %v4692_v54 }
  0x49   :  { %967 = vmatpush.bf16.msra.mxu2 %v4255_v0  ;;  %766 = vmatmul.bf16.vlgmr.msrb.gmra.mxu3 %v4692_v54  ;;  %v4722_v0 = vld [vmem:[%s5670_s1 + $0x268] sm:$0xff] }
  0x4a   :  { %986 = vmatpush.bf16.msra.mxu3 %v4260_v1  ;;  %5746 = vst [vmem:[#allocation23_spill] sm:$0xff] %v4722_v0  ;;  %v4731_v1 = vld [vmem:[%s5670_s1 + $0x220] sm:$0xff] }
  0x4b   :  { %857 = vmatpush.bf16.msra.mxu0 %v4699_v45  ;;  %5747 = vst [vmem:[#allocation24_spill] sm:$0xff] %v4731_v1 }
  0x4c   :  { %945 = vmatpush.bf16.msra.mxu1 %v4704_v57 }
  0x4d   :  { %968 = vmatpush.bf16.msra.mxu2 %v4277_v4  ;;  %v2998_v4 = vld [vmem:[%s5669_s0 + $0x22] ss:$2 sm:$0xff] }
  0x4e   :  { %987 = vmatpush.bf16.msra.mxu3 %v4282_v5  ;;  %v2999_v5 = vld [vmem:[%s5669_s0 + $0x32] ss:$2 sm:$0xff] }
  0x4f   :  { %858 = vmatpush.bf16.msra.mxu0 %v4717_v48  ;;  %v4766_v63 = vpack.c.bf16 %v2999_v5, %v2998_v4 }
  0x50   :  { %946 = vmatpush.bf16.msra.mxu1 %v4722_v0  ;;  %v4780_v0 = vld [vmem:[%s5670_s1 + $0x250] sm:$0xff] }
  0x51   :  { %969 = vmatpush.bf16.msra.mxu2 %v4301_v8  ;;  %v3099_v8 = vld [vmem:[%s5669_s0 + $0x33] ss:$2 sm:$0xff] }
  0x52   :  { %988 = vmatpush.bf16.msra.mxu3 %v4306_v9  ;;  %v4757_v9 = vld [vmem:[%s5670_s1 + $0x218] sm:$0xff] }
  0x53   :  { %859 = vmatpush.bf16.msra.mxu0 %v4731_v1  ;;  %v4775_v1 = vld [vmem:[%s5670_s1 + $0x210] sm:$0xff] }
  0x54   :  { %947 = vmatpush.bf16.msra.mxu1 %v4736_v49  ;;  %v4768_v49 = vpack.c.bf16 %v3099_v8, %v3098_v62 }
  0x55   :  { %970 = vmatpush.bf16.msra.mxu2 %v4325_v12  ;;  %v4793_v12 = vld [vmem:[%s5670_s1 + $0x208] sm:$0xff] }
  0x56   :  { %989 = vmatpush.bf16.msra.mxu3 %v4330_v13  ;;  %497 = vmatmul.bf16.gmra.mxu0 %v4766_v63  ;;  %v4798_v13 = vld [vmem:[%s5670_s1 + $0x248] sm:$0xff] }
  0x57   :  { %860 = vmatpush.bf16.msra.mxu0 %v4757_v9  ;;  %585 = vmatmul.bf16.gmra.mxu1 %v4766_v63 }
  0x58   :  { %948 = vmatpush.bf16.msra.mxu1 %v4762_v56  ;;  %683 = vmatmul.bf16.gmra.mxu2 %v4768_v49 }
  0x59   :  { %971 = vmatpush.bf16.msra.mxu2 %v4349_v16  ;;  %771 = vmatmul.bf16.gmra.mxu3 %v4768_v49  ;;  %v4807_v16 = vld [vmem:[%s5670_s1 + $0x200] sm:$0xff] }
  0x5a   :  { %990 = vmatpush.bf16.msra.mxu3 %v4354_v17  ;;  %v4812_v17 = vld [vmem:[%s5670_s1 + $0x240] sm:$0xff] }
  0x5b   :  { %861 = vmatpush.bf16.msra.mxu0 %v4775_v1 }
  0x5c   :  { %949 = vmatpush.bf16.msra.mxu1 %v4780_v0 }
  0x5d   :  { %972 = vmatpush.bf16.msra.mxu2 %v4373_v20  ;;  %v3196_v20 = vld [vmem:[%s5669_s0 + $0x4] ss:$2 sm:$0xff] }
  0x5e   :  { %991 = vmatpush.bf16.msra.mxu3 %v4378_v21  ;;  %v3197_v21 = vld [vmem:[%s5669_s0 + $0x14] ss:$2 sm:$0xff] }
  0x5f   :  { %862 = vmatpush.bf16.msra.mxu0 %v4793_v12  ;;  %v4826_v4 = vpack.c.bf16 %v3197_v21, %v3196_v20 }
  0x60   :  { %950 = vmatpush.bf16.msra.mxu1 %v4798_v13 }
  0x61   :  { %973 = vmatpush.bf16.msra.mxu2 %v4395_v24  ;;  %v5758_v24 = vld [vmem:[#allocation16_spill] sm:$0xff] }
  0x62   :  { %992 = vmatpush.bf16.msra.mxu3 %v4400_v25  ;;  %v5759_v25 = vld [vmem:[#allocation17_spill] sm:$0xff] }
  0x63   :  { %863 = vmatpush.bf16.msra.mxu0 %v4807_v16 }
  0x64   :  { %951 = vmatpush.bf16.msra.mxu1 %v4812_v17 }
  0x65   :  { %974 = vmatpush.bf16.msra.mxu2 %v4419_v28  ;;  %v5762_v28 = vld [vmem:[#allocation20_spill] sm:$0xff] }
  0x66   :  { %993 = vmatpush.bf16.msra.mxu3 %v4424_v29  ;;  %864 = vmatmul.bf16.vlgmr.msra.gmra.mxu0 %v4826_v4  ;;  %v5763_v29 = vld [vmem:[#allocation21_spill] sm:$0xff] }
  0x67   :  { %1005 = vmatpush.bf16.msrb.mxu0 %v4265_v2  ;;  %952 = vmatmul.bf16.vlgmr.msra.gmra.mxu1 %v4826_v4  ;;  %v3198_v2 = vld [vmem:[%s5669_s0 + $0x24] ss:$2 sm:$0xff] }
  0x68   :  { %1024 = vmatpush.bf16.msrb.mxu1 %v4270_v3  ;;  %975 = vmatmul.bf16.vlgmr.msra.gmra.mxu2 %v4688_v53  ;;  %v3199_v3 = vld [vmem:[%s5669_s0 + $0x34] ss:$2 sm:$0xff] }
  0x69   :  { %1043 = vmatpush.bf16.msrb.mxu2 %v4455_v36  ;;  %994 = vmatmul.bf16.vlgmr.msra.gmra.mxu3 %v4462_v38  ;;  %v3297_v36 = vld [vmem:[%s5669_s0 + $0x15] ss:$2 sm:$0xff] }
  0x6a   :  { %1066 = vmatpush.bf16.msrb.mxu3 %v4460_v37 }
  0x6b   :  { %1006 = vmatpush.bf16.msrb.mxu0 %v4289_v6  ;;  %v4854_v6 = vpack.c.bf16 %v3199_v3, %v3198_v2 }
  0x6c   :  { %1025 = vmatpush.bf16.msrb.mxu1 %v4294_v7  ;;  %v5749_v7 = vld [vmem:[#allocation10_spill] sm:$0xff] }
  0x6d   :  { %1044 = vmatpush.bf16.msrb.mxu2 %v4483_v42 }
  0x6e   :  { %1067 = vmatpush.bf16.msrb.mxu3 %v4488_v43 }
  0x6f   :  { %1007 = vmatpush.bf16.msrb.mxu0 %v4313_v10  ;;  %v5750_v10 = vld [vmem:[#allocation11_spill] sm:$0xff] }
  0x70   :  { %1026 = vmatpush.bf16.msrb.mxu1 %v4318_v11  ;;  %v5751_v11 = vld [vmem:[#allocation12_spill] sm:$0xff] }
  0x71   :  { %1045 = vmatpush.bf16.msrb.mxu2 %v4509_v46 }
  0x72   :  { %1068 = vmatpush.bf16.msrb.mxu3 %v4514_v47  ;;  %v3298_v47 = vld [vmem:[%s5669_s0 + $0x25] ss:$2 sm:$0xff] }
  0x73   :  { %1008 = vmatpush.bf16.msrb.mxu0 %v4337_v14  ;;  %v5752_v14 = vld [vmem:[#allocation23_spill] sm:$0xff] }
  0x74   :  { %1027 = vmatpush.bf16.msrb.mxu1 %v4342_v15  ;;  %v5753_v15 = vld [vmem:[#allocation13_spill] sm:$0xff] }
  0x75   :  { %1046 = vmatpush.bf16.msrb.mxu2 %v4533_v50  ;;  %v3299_v50 = vld [vmem:[%s5669_s0 + $0x35] ss:$2 sm:$0xff] }
  0x76   :  { %1069 = vmatpush.bf16.msrb.mxu3 %v4538_v51  ;;  %869 = vmatmul.bf16.gmra.mxu0 %v4854_v6 }
  0x77   :  { %1009 = vmatpush.bf16.msrb.mxu0 %v4361_v18  ;;  %957 = vmatmul.bf16.gmra.mxu1 %v4854_v6  ;;  %v5754_v18 = vld [vmem:[#allocation14_spill] sm:$0xff] }
  0x78   :  { %1028 = vmatpush.bf16.msrb.mxu1 %v4366_v19  ;;  %980 = vmatmul.bf16.gmra.mxu2 %v4766_v63  ;;  %v5755_v19 = vld [vmem:[#allocation24_spill] sm:$0xff] }
  0x79   :  { %1047 = vmatpush.bf16.msrb.mxu2 %v4569_v58  ;;  %999 = vmatmul.bf16.gmra.mxu3 %v4576_v60 }
  0x7a   :  { %1070 = vmatpush.bf16.msrb.mxu3 %v4574_v59 }
  0x7b   :  { %1010 = vmatpush.bf16.msrb.mxu0 %v4385_v22  ;;  %v5756_v22 = vld [vmem:[#allocation25_spill] sm:$0xff] }
  0x7c   :  { %1029 = vmatpush.bf16.msrb.mxu1 %v4390_v23  ;;  %v5757_v23 = vld [vmem:[#allocation15_spill] sm:$0xff] }
  0x7d   :  { %1048 = vmatpush.bf16.msrb.mxu2 %v4595_v30 }
  0x7e   :  { %1071 = vmatpush.bf16.msrb.mxu3 %v4600_v31 }
  0x7f   :  { %1011 = vmatpush.bf16.msrb.mxu0 %v4409_v26  ;;  %v5760_v26 = vld [vmem:[#allocation18_spill] sm:$0xff] }
  0x80   :  { %1030 = vmatpush.bf16.msrb.mxu1 %v4414_v27  ;;  %v5761_v27 = vld [vmem:[#allocation19_spill] sm:$0xff] }
  0x81   :  { %1049 = vmatpush.bf16.msrb.mxu2 %v4621_v39 }
  0x82   :  { %1072 = vmatpush.bf16.msrb.mxu3 %v4626_v52 }
  0x83   :  { %1012 = vmatpush.bf16.msrb.mxu0 %v4445_v34  ;;  %v5764_v34 = vld [vmem:[#allocation22_spill] sm:$0xff] }
  0x84   :  { %1031 = vmatpush.bf16.msrb.mxu1 %v4450_v35  ;;  %v3296_v35 = vld [vmem:[%s5669_s0 + $0x5] ss:$2 sm:$0xff] }
  0x85   :  { %1050 = vmatpush.bf16.msrb.mxu2 %v4645_v55 }
  0x86   :  { %1073 = vmatpush.bf16.msrb.mxu3 %v4650_v61  ;;  %1013 = vmatmul.bf16.vlgmr.msrb.gmra.mxu0 %v4688_v53 }
  0x87   :  { %1089 = vmatpush.bf16.msra.mxu0 %v4471_v40  ;;  %1032 = vmatmul.bf16.vlgmr.msrb.gmra.mxu1 %v4462_v38  ;;  %v1143_v40 = vpack.c.bf16 %v3297_v36, %v3296_v35 }
  0x88   :  { %1112 = vmatpush.bf16.msra.mxu1 %v4476_v41  ;;  %1051 = vmatmul.bf16.vlgmr.msrb.gmra.mxu2 %v4692_v54 }
  0x89   :  { %1145 = vmatpush.bf16.msra.mxu2 %v4655_v33  ;;  %1074 = vmatmul.bf16.vlgmr.msrb.gmra.mxu3 %v4692_v54 }
  0x8a   :  { %1168 = vmatpush.bf16.msra.mxu3 %v4660_v32 }
  0x8b   :  { %1090 = vmatpush.bf16.msra.mxu0 %v4497_v44 }
  0x8c   :  { %1113 = vmatpush.bf16.msra.mxu1 %v5749_v7 }
  0x8d   :  { %1146 = vmatpush.bf16.msra.mxu2 %v4699_v45 }
  0x8e   :  { %1169 = vmatpush.bf16.msra.mxu3 %v4704_v57 }
  0x8f   :  { %1091 = vmatpush.bf16.msra.mxu0 %v5750_v10 }
  0x90   :  { %1114 = vmatpush.bf16.msra.mxu1 %v5751_v11 }
  0x91   :  { %1147 = vmatpush.bf16.msra.mxu2 %v4717_v48 }
  0x92   :  { %1170 = vmatpush.bf16.msra.mxu3 %v5752_v14 }
  0x93   :  { %1092 = vmatpush.bf16.msra.mxu0 %v5753_v15 }
  0x94   :  { %1115 = vmatpush.bf16.msra.mxu1 %v5754_v18 }
  0x95   :  { %1148 = vmatpush.bf16.msra.mxu2 %v5755_v19  ;;  %v5092_v19 = vld [vmem:[#allocation4] sm:$0xff] }
  0x96   :  { %1171 = vmatpush.bf16.msra.mxu3 %v5756_v22  ;;  %1018 = vmatmul.bf16.gmra.mxu0 %v4766_v63  ;;  %5782 = vst [vmem:[#allocation27_spill] sm:$0xff] %v5092_v19 }
  0x97   :  { %1093 = vmatpush.bf16.msra.mxu0 %v5757_v23  ;;  %1037 = vmatmul.bf16.gmra.mxu1 %v4576_v60  ;;  %v1144_v60 = vpack.c.bf16 %v3299_v50, %v3298_v47 }
  0x98   :  { %1116 = vmatpush.bf16.msra.mxu1 %v5758_v24  ;;  %1056 = vmatmul.bf16.gmra.mxu2 %v4768_v49 }
  0x99   :  { %1149 = vmatpush.bf16.msra.mxu2 %v4757_v9  ;;  %1079 = vmatmul.bf16.gmra.mxu3 %v4768_v49 }
  0x9a   :  { %1172 = vmatpush.bf16.msra.mxu3 %v4762_v56 }
  0x9b   :  { %1094 = vmatpush.bf16.msra.mxu0 %v5759_v25 }
  0x9c   :  { %1117 = vmatpush.bf16.msra.mxu1 %v5760_v26 }
  0x9d   :  { %1150 = vmatpush.bf16.msra.mxu2 %v4775_v1 }
  0x9e   :  { %1173 = vmatpush.bf16.msra.mxu3 %v4780_v0 }
  0x9f   :  { %1095 = vmatpush.bf16.msra.mxu0 %v5761_v27 }
  0xa0   :  { %1118 = vmatpush.bf16.msra.mxu1 %v5762_v28 }
  0xa1   :  { %1151 = vmatpush.bf16.msra.mxu2 %v4793_v12 }
  0xa2   :  { %1174 = vmatpush.bf16.msra.mxu3 %v4798_v13 }
  0xa3   :  { %1096 = vmatpush.bf16.msra.mxu0 %v5763_v29  ;;  %v181_v37 = vpop.f32.mrf.mxu0 }
  0xa4   :  { %1119 = vmatpush.bf16.msra.mxu1 %v5764_v34  ;;  %v248_v38 = vpop.f32.mrf.mxu1 }
  0xa5   :  { %1152 = vmatpush.bf16.msra.mxu2 %v4807_v16  ;;  %v249_v41 = vadd.f32 %v248_v38, %v181_v37  ;;  %v5090_v38 = vld [vmem:[#allocation4 + $0x80] sm:$0xff] }
  0xa6   :  { %1175 = vmatpush.bf16.msra.mxu3 %v4812_v17  ;;  %1097 = vmatmul.bf16.vlgmr.msra.gmra.mxu0 %v4826_v4  ;;  %5781 = vst [vmem:[#allocation26_spill] sm:$0xff] %v5090_v38 }
  0xa7   :  { %1120 = vmatmul.bf16.vlgmr.msra.gmra.mxu1 %v4826_v4 }
  0xa8   :  { %1153 = vmatmul.bf16.vlgmr.msra.gmra.mxu2 %v1143_v40 }
  0xa9   :  { %1176 = vmatmul.bf16.vlgmr.msra.gmra.mxu3 %v1143_v40 }
  0xab   :  { %v332_v42 = vpop.f32.mrf.mxu2  ;;  %v4924_v45 = vpop.f32.mrf.mxu0 }
  0xac   :  { %v399_v43 = vpop.f32.mrf.mxu3  ;;  %v4926_v46 = vpop.f32.mrf.mxu1 }
  0xad   :  { %v400_v44 = vadd.f32 %v399_v43, %v332_v42 }
  0xb3   :  { %v4934_v51 = vpop.f32.mrf.mxu2  ;;  %v186_v58 = vpop.f32.mrf.mxu0 }
  0xb4   :  { %v4936_v56 = vpop.f32.mrf.mxu3  ;;  %v253_v59 = vpop.f32.mrf.mxu1 }
  0xb5   :  { %v254_v63 = vadd.f32 %v253_v59, %v186_v58  ;;  %v4976_v59 = vld [vmem:[#allocation4 + $0xb8] sm:$0xff] }
  0xb6   :  { %1102 = vmatmul.bf16.gmra.mxu0 %v4854_v6 }
  0xb7   :  { %1125 = vmatmul.bf16.gmra.mxu1 %v4854_v6  ;;  %1326 = vmatpush.bf16.msrb.mxu0 %v4976_v59 }
  0xb8   :  { %1158 = vmatmul.bf16.gmra.mxu2 %v1144_v60 }
  0xb9   :  { %1181 = vmatmul.bf16.gmra.mxu3 %v1144_v60  ;;  %v4978_v60 = vld [vmem:[#allocation4 + $0x38] sm:$0xff] }
  0xba   :  { %1388 = vmatpush.bf16.msrb.mxu1 %v4978_v60 }
  0xbb   :  { %v337_v30 = vpop.f32.mrf.mxu2  ;;  %v188_v33 = vpop.f32.mrf.mxu0 }
  0xbc   :  { %v404_v31 = vpop.f32.mrf.mxu3  ;;  %v255_v39 = vpop.f32.mrf.mxu1 }
  0xbd   :  { %v405_v32 = vadd.f32 %v404_v31, %v337_v30  ;;  %v256_v36 = vadd.f32 %v255_v39, %v188_v33  ;;  %v4990_v33 = vld [vmem:[#allocation4 + $0xb0] sm:$0xff] }
  0xbe   :  { %v4992_v39 = vld [vmem:[#allocation4 + $0x30] sm:$0xff]  ;;  %1327 = vmatpush.bf16.msrb.mxu0 %v4990_v33 }
  0xbf   :  { %1389 = vmatpush.bf16.msrb.mxu1 %v4992_v39 }
  0xc3   :  { %v339_v52 = vpop.f32.mrf.mxu2  ;;  %v493_v54 = vpop.f32.mrf.mxu0 }
  0xc4   :  { %v406_v53 = vpop.f32.mrf.mxu3  ;;  %v581_v55 = vpop.f32.mrf.mxu1  ;;  %v503_v61 = vadd.f32 %v493_v54, %v249_v41  ;;  %v5000_v54 = vld [vmem:[#allocation4 + $0x70] sm:$0xff] }
  0xc5   :  { %v591_v57 = vadd.f32 %v581_v55, %v400_v44  ;;  %v407_v37 = vadd.f32 %v406_v53, %v339_v52  ;;  %v4998_v53 = vld [vmem:[#allocation4 + $0xf0] sm:$0xff]  ;;  %5768 = vst [vmem:[#allocation23_spill] sm:$0xff] %v5000_v54  ;;  %v5084_v52 = vld [vmem:[#allocation4 + $0x48] sm:$0xff] }
  0xc6   :  { %5767 = vst [vmem:[#allocation12_spill] sm:$0xff] %v4998_v53 }
  0xc7   :  { %5780 = vst [vmem:[#allocation22_spill] sm:$0xff] %v5084_v52 }
  0xcb   :  { %v679_v48 = vpop.f32.mrf.mxu2  ;;  %v4940_v5 = vpop.f32.mrf.mxu0 }
  0xcc   :  { %v767_v0 = vpop.f32.mrf.mxu3  ;;  %v689_v1 = vadd.f32 %v679_v48, %v503_v61  ;;  %v4942_v62 = vpop.f32.mrf.mxu1 }
  0xcd   :  { %v777_v49 = vadd.f32 %v767_v0, %v591_v57  ;;  %v5014_v0 = vld [vmem:[#allocation4 + $0xa8] sm:$0xff] }
  0xce   :  { %1328 = vmatpush.bf16.msrb.mxu0 %v5014_v0 }
  0xd3   :  { %v4944_v8 = vpop.f32.mrf.mxu2  ;;  %v498_v12 = vpop.f32.mrf.mxu0 }
  0xd4   :  { %v4946_v9 = vpop.f32.mrf.mxu3  ;;  %v586_v13 = vpop.f32.mrf.mxu1  ;;  %v505_v16 = vadd.f32 %v498_v12, %v254_v63  ;;  %v4980_v63 = vld [vmem:[#allocation4 + $0xf8] sm:$0xff]  ;;  %v5020_v12 = vld [vmem:[#allocation4 + $0x68] sm:$0xff] }
  0xd5   :  { %v593_v17 = vadd.f32 %v586_v13, %v405_v32  ;;  %5765 = vst [vmem:[#allocation10_spill] sm:$0xff] %v4980_v63  ;;  %v4986_v32 = vld [vmem:[#allocation4 + $0x78] sm:$0xff]  ;;  %1467 = vmatpush.bf16.msrb.mxu2 %v4980_v63  ;;  %v5024_v13 = vld [vmem:[#allocation4 + $0xa0] sm:$0xff] }
  0xd6   :  { %5766 = vst [vmem:[#allocation11_spill] sm:$0xff] %v4986_v32  ;;  %1529 = vmatpush.bf16.msrb.mxu3 %v4986_v32  ;;  %1329 = vmatpush.bf16.msrb.mxu0 %v5024_v13  ;;  %v5126_v32 = vld [vmem:[#allocation4 + $0x1b0] sm:$0xff] }
  0xd7   :  { %5770 = vst [vmem:[#allocation14_spill] sm:$0xff] %v5020_v12 }
  0xd8   :  { %5791 = vst [vmem:[#allocation36_spill] sm:$0xff] %v5126_v32 }
  0xd9   :  { %1468 = vmatpush.bf16.msrb.mxu2 %v4998_v53  ;;  %v5124_v53 = vld [vmem:[#allocation4 + $0x170] sm:$0xff] }
  0xda   :  { %1530 = vmatpush.bf16.msrb.mxu3 %v5000_v54  ;;  %v5122_v54 = vld [vmem:[#allocation4 + $0x130] sm:$0xff]  ;;  %5790 = vst [vmem:[#allocation35_spill] sm:$0xff] %v5124_v53 }
  0xdb   :  { %v684_v20 = vpop.f32.mrf.mxu2  ;;  %v500_v3 = vpop.f32.mrf.mxu0  ;;  %5789 = vst [vmem:[#allocation34_spill] sm:$0xff] %v5122_v54 }
  0xdc   :  { %v772_v21 = vpop.f32.mrf.mxu3  ;;  %v691_v4 = vadd.f32 %v684_v20, %v505_v16  ;;  %v588_v6 = vpop.f32.mrf.mxu1  ;;  %v506_v40 = vadd.f32 %v500_v3, %v256_v36  ;;  %v5026_v16 = vld [vmem:[#allocation4 + $0x20] sm:$0xff]  ;;  %v5064_v36 = vld [vmem:[#allocation4 + $0x50] sm:$0xff] }
  0xdd   :  { %v779_v2 = vadd.f32 %v772_v21, %v593_v17  ;;  %v594_v41 = vadd.f32 %v588_v6, %v407_v37  ;;  %v5030_v17 = vld [vmem:[#allocation4 + $0xe0] sm:$0xff]  ;;  %v5046_v6 = vld [vmem:[#allocation4 + $0x98] sm:$0xff]  ;;  %5776 = vst [vmem:[#allocation18_spill] sm:$0xff] %v5064_v36 }
  0xde   :  { %1531 = vmatpush.bf16.msrb.mxu3 %v5020_v12  ;;  %5771 = vst [vmem:[#allocation24_spill] sm:$0xff] %v5030_v17  ;;  %v5032_v20 = vld [vmem:[#allocation4 + $0x60] sm:$0xff]  ;;  %1330 = vmatpush.bf16.msrb.mxu0 %v5046_v6 }
  0xdf   :  { %5772 = vst [vmem:[#allocation25_spill] sm:$0xff] %v5032_v20 }
  0xe2   :  { %1532 = vmatpush.bf16.msrb.mxu3 %v5032_v20  ;;  %v5104_v20 = vld [vmem:[#allocation4 + $0x1b8] sm:$0xff] }
  0xe3   :  { %v686_v7 = vpop.f32.mrf.mxu2  ;;  %v865_v11 = vpop.f32.mrf.mxu0  ;;  %5787 = vst [vmem:[#allocation32_spill] sm:$0xff] %v5104_v20 }
  0xe4   :  { %v774_v10 = vpop.f32.mrf.mxu3  ;;  %v953_v14 = vpop.f32.mrf.mxu1  ;;  %v4948_v15 = vadd.f32 %v865_v11, %v689_v1  ;;  %v692_v42 = vadd.f32 %v686_v7, %v506_v40  ;;  %v5016_v1 = vld [vmem:[#allocation4 + $0x28] sm:$0xff]  ;;  %v5048_v7 = vld [vmem:[#allocation4 + $0x18] sm:$0xff] }
  0xe5   :  { %v4950_v18 = vadd.f32 %v953_v14, %v777_v49  ;;  %v780_v43 = vadd.f32 %v774_v10, %v594_v41  ;;  %v5018_v49 = vld [vmem:[#allocation4 + $0xe8] sm:$0xff]  ;;  %1390 = vmatpush.bf16.msrb.mxu1 %v5016_v1  ;;  %v5050_v10 = vld [vmem:[#allocation4 + $0xd8] sm:$0xff]  ;;  %v5058_v14 = vld [vmem:[#allocation4 + $0x90] sm:$0xff] }
  0xe6   :  { %5769 = vst [vmem:[#allocation13_spill] sm:$0xff] %v5018_v49  ;;  %1469 = vmatpush.bf16.msrb.mxu2 %v5018_v49  ;;  %v5052_v11 = vld [vmem:[#allocation4 + $0x58] sm:$0xff]  ;;  %1331 = vmatpush.bf16.msrb.mxu0 %v5058_v14 }
  0xe7   :  { %5773 = vst [vmem:[#allocation15_spill] sm:$0xff] %v5050_v10  ;;  %1533 = vmatpush.bf16.msrb.mxu3 %v5052_v11 }
  0xe8   :  { %5774 = vst [vmem:[#allocation16_spill] sm:$0xff] %v5052_v11  ;;  %v5098_v11 = vld [vmem:[#allocation4 + $0x138] sm:$0xff] }
  0xe9   :  { %1391 = vmatpush.bf16.msrb.mxu1 %v5026_v16  ;;  %5785 = vst [vmem:[#allocation30_spill] sm:$0xff] %v5098_v11 }
  0xea   :  { %1470 = vmatpush.bf16.msrb.mxu2 %v5030_v17 }
  0xeb   :  { %v4954_v22 = vpop.f32.mrf.mxu2  ;;  %v4958_v24 = vpop.f32.mrf.mxu0  ;;  %1534 = vmatpush.bf16.msrb.mxu3 %v5064_v36  ;;  %v5094_v36 = vld [vmem:[#allocation4 + $0xc0] sm:$0xff] }
  0xec   :  { %v4956_v23 = vpop.f32.mrf.mxu3  ;;  %v4960_v25 = vpop.f32.mrf.mxu1  ;;  %5783 = vst [vmem:[#allocation28_spill] sm:$0xff] %v5094_v36 }
  0xed   :  { %1392 = vmatpush.bf16.msrb.mxu1 %v5048_v7 }
  0xee   :  { %1471 = vmatpush.bf16.msrb.mxu2 %v5050_v10  ;;  %v5100_v10 = vld [vmem:[#allocation4 + $0x178] sm:$0xff] }
  0xef   :  { %1535 = vmatpush.bf16.msrb.mxu3 %v5084_v52  ;;  %5786 = vst [vmem:[#allocation31_spill] sm:$0xff] %v5100_v10 }
  0xf3   :  { %v4962_v26 = vpop.f32.mrf.mxu2  ;;  %v870_v28 = vpop.f32.mrf.mxu0 }
  0xf4   :  { %v4964_v27 = vpop.f32.mrf.mxu3  ;;  %v958_v29 = vpop.f32.mrf.mxu1  ;;  %v4966_v34 = vadd.f32 %v870_v28, %v691_v4  ;;  %v5060_v28 = vld [vmem:[#allocation4 + $0x10] sm:$0xff] }
  0xf5   :  { %v4968_v35 = vadd.f32 %v958_v29, %v779_v2  ;;  %v5062_v29 = vld [vmem:[#allocation4 + $0xd0] sm:$0xff]  ;;  %1393 = vmatpush.bf16.msrb.mxu1 %v5060_v28 }
  0xf6   :  { %5775 = vst [vmem:[#allocation17_spill] sm:$0xff] %v5062_v29  ;;  %1472 = vmatpush.bf16.msrb.mxu2 %v5062_v29  ;;  %v5096_v29 = vld [vmem:[#allocation4 + $0x40] sm:$0xff] }
  0xf7   :  { %5784 = vst [vmem:[#allocation29_spill] sm:$0xff] %v5096_v29  ;;  %1536 = vmatpush.bf16.msrb.mxu3 %v5096_v29  ;;  %v5134_v29 = vld [vmem:[#allocation4 + $0x128] sm:$0xff] }
  0xf8   :  { %5793 = vst [vmem:[#allocation38_spill] sm:$0xff] %v5134_v29 }
  0xfb   :  { %v4972_v44 = vpop.f32.mrf.mxu2  ;;  %v872_v50 = vpop.f32.mrf.mxu0 }
  0xfc   :  { %v4974_v47 = vpop.f32.mrf.mxu3  ;;  %v960_v58 = vpop.f32.mrf.mxu1  ;;  %v4982_v30 = vadd.f32 %v872_v50, %v692_v42  ;;  %v5080_v50 = vld [vmem:[#allocation4 + $0x8] sm:$0xff] }
  0xfd   :  { %v4984_v31 = vadd.f32 %v960_v58, %v780_v43  ;;  %v5078_v43 = vld [vmem:[#allocation4 + $0x88] sm:$0xff]  ;;  %5778 = vst [vmem:[#allocation20_spill] sm:$0xff] %v5080_v50  ;;  %1394 = vmatpush.bf16.msrb.mxu1 %v5080_v50  ;;  %v996_v50 = vadd.f32 %v4956_v23, %v4954_v22 }
  0xfe   :  { %5777 = vst [vmem:[#allocation19_spill] sm:$0xff] %v5078_v43  ;;  %v5082_v58 = vld [vmem:[#allocation4 + $0xc8] sm:$0xff]  ;;  %1332 = vmatpush.bf16.msrb.mxu0 %v5078_v43  ;;  %v5174_v43 = vld [vmem:[#allocation4 + $0x1d8] sm:$0xff] }
  0xff   :  { %5779 = vst [vmem:[#allocation21_spill] sm:$0xff] %v5082_v58  ;;  %1473 = vmatpush.bf16.msrb.mxu2 %v5082_v58  ;;  %v5106_v58 = vld [vmem:[#allocation4 + $0x1f8] sm:$0xff] }
 0x100   :  { %5788 = vst [vmem:[#allocation33_spill] sm:$0xff] %v5106_v58  ;;  %1861 = vmatpush.bf16.msra.mxu3 %v5106_v58  ;;  %v5138_v58 = vld [vmem:[#allocation4 + $0x1a8] sm:$0xff] }
 0x101   :  { %1395 = vmatpush.bf16.msrb.mxu1 %v5092_v19  ;;  %5795 = vst [vmem:[#allocation40_spill] sm:$0xff] %v5138_v58 }
 0x102   :  { %1333 = vmatpush.bf16.msrb.mxu0 %v5090_v38  ;;  %v5156_v38 = vld [vmem:[#allocation4 + $0x1a0] sm:$0xff] }
 0x103   :  { %v5004_v55 = vpop.f32.mrf.mxu2  ;;  %v5010_v57 = vpop.f32.mrf.mxu0  ;;  %1474 = vmatpush.bf16.msrb.mxu2 %v5094_v36  ;;  %v5128_v36 = vld [vmem:[#allocation4 + $0x1f0] sm:$0xff]  ;;  %5799 = vst [vmem:[#allocation44_spill] sm:$0xff] %v5156_v38 }
 0x104   :  { %v5006_v61 = vpop.f32.mrf.mxu3  ;;  %v5012_v48 = vpop.f32.mrf.mxu1  ;;  %5792 = vst [vmem:[#allocation37_spill] sm:$0xff] %v5128_v36  ;;  %1862 = vmatpush.bf16.msra.mxu3 %v5128_v36  ;;  %v5152_v36 = vld [vmem:[#allocation4 + $0x120] sm:$0xff] }
 0x105   :  { %1694 = vmatpush.bf16.msra.mxu1 %v5100_v10  ;;  %v5140_v10 = vld [vmem:[#allocation4 + $0x1e8] sm:$0xff]  ;;  %5797 = vst [vmem:[#allocation42_spill] sm:$0xff] %v5152_v36 }
 0x106   :  { %1613 = vmatpush.bf16.msra.mxu0 %v5098_v11  ;;  %5796 = vst [vmem:[#allocation41_spill] sm:$0xff] %v5140_v10 }
 0x107   :  { %1780 = vmatpush.bf16.msra.mxu2 %v5104_v20  ;;  %v5136_v20 = vld [vmem:[#allocation4 + $0x168] sm:$0xff] }
 0x108   :  { %5794 = vst [vmem:[#allocation39_spill] sm:$0xff] %v5136_v20  ;;  %1863 = vmatpush.bf16.msra.mxu3 %v5140_v10  ;;  %v5168_v10 = vld [vmem:[#allocation4 + $0x118] sm:$0xff] }
 0x109   :  { %1695 = vmatpush.bf16.msra.mxu1 %v5124_v53 }
 0x10a   :  { %1614 = vmatpush.bf16.msra.mxu0 %v5122_v54  ;;  %v1034_v54 = vadd.f32 %v5012_v48, %v5010_v57  ;;  %v5160_v57 = vld [vmem:[#allocation4 + $0x1e0] sm:$0xff] }
 0x10b   :  { %v5036_v21 = vpop.f32.mrf.mxu2  ;;  %v5042_v2 = vpop.f32.mrf.mxu0  ;;  %1781 = vmatpush.bf16.msra.mxu2 %v5126_v32  ;;  %v5154_v32 = vld [vmem:[#allocation4 + $0x160] sm:$0xff]  ;;  %5800 = vst [vmem:[#allocation45_spill] sm:$0xff] %v5160_v57 }
 0x10c   :  { %v5038_v4 = vpop.f32.mrf.mxu3  ;;  %v5044_v3 = vpop.f32.mrf.mxu1  ;;  %5798 = vst [vmem:[#allocation43_spill] sm:$0xff] %v5154_v32  ;;  %v1062_v48 = vadd.f32 %v5036_v21, %v996_v50  ;;  %1864 = vmatpush.bf16.msra.mxu3 %v5160_v57  ;;  %v402_v21 = vadd.f32 %v4936_v56, %v4934_v51  ;;  %v5190_v51 = vld [vmem:[#allocation4 + $0x190] sm:$0xff]  ;;  %v998_v56 = vadd.f32 %v4964_v27, %v4962_v26 }
 0x10d   :  { %1696 = vmatpush.bf16.msra.mxu1 %v5136_v20  ;;  %v5172_v20 = vld [vmem:[#allocation4 + $0x198] sm:$0xff]  ;;  %v5801_v26 = vmax.f32 %v4948_v15, %v4950_v18 }
 0x10e   :  { %1615 = vmatpush.bf16.msra.mxu0 %v5134_v29  ;;  %v1085_v29 = vadd.f32 %v5038_v4, %v1034_v54  ;;  %v251_v54 = vadd.f32 %v4926_v46, %v4924_v45  ;;  %v5186_v45 = vld [vmem:[#allocation4 + $0x110] sm:$0xff] }
 0x10f   :  { %1782 = vmatpush.bf16.msra.mxu2 %v5138_v58  ;;  %v5170_v58 = vld [vmem:[#allocation4 + $0x158] sm:$0xff]  ;;  %v5188_v46 = vld [vmem:[#allocation4 + $0x150] sm:$0xff] }
 0x110   :  { %1865 = vmatpush.bf16.msra.mxu3 %v5174_v43 }
 0x111   :  { %1697 = vmatpush.bf16.msra.mxu1 %v5154_v32 }
 0x112   :  { %1616 = vmatpush.bf16.msra.mxu0 %v5152_v36 }
 0x113   :  { %v5068_v37 = vpop.f32.mrf.mxu2  ;;  %v5074_v41 = vpop.f32.mrf.mxu0  ;;  %1783 = vmatpush.bf16.msra.mxu2 %v5156_v38 }
 0x114   :  { %v5070_v40 = vpop.f32.mrf.mxu3  ;;  %v5076_v42 = vpop.f32.mrf.mxu1 }
 0x115   :  { %1698 = vmatpush.bf16.msra.mxu1 %v5170_v58 }
 0x116   :  { %1617 = vmatpush.bf16.msra.mxu0 %v5168_v10 }
 0x117   :  { %1784 = vmatpush.bf16.msra.mxu2 %v5172_v20 }
 0x119   :  { %1699 = vmatpush.bf16.msra.mxu1 %v5188_v46 }
 0x11a   :  { %1618 = vmatpush.bf16.msra.mxu0 %v5186_v45 }
 0x11b   :  { %v5108_v52 = vpop.f32.mrf.mxu2  ;;  %v5114_v12 = vpop.f32.mrf.mxu0  ;;  %1785 = vmatpush.bf16.msra.mxu2 %v5190_v51 }
 0x11c   :  { %v5110_v17 = vpop.f32.mrf.mxu3  ;;  %v5116_v49 = vpop.f32.mrf.mxu1 }
 0x123   :  { %v5142_v11 = vpop.f32.mrf.mxu2  ;;  %v1098_v53 = vpop.f32.mrf.mxu0 }
 0x124   :  { %v5144_v63 = vpop.f32.mrf.mxu3  ;;  %v1121_v19 = vpop.f32.mrf.mxu1  ;;  %v1108_v22 = vadd.f32 %v1098_v53, %v1062_v48  ;;  %v592_v53 = vadd.f32 %v4942_v62, %v402_v21  ;;  %v5201_v62 = vld [vmem:[#allocation4 + $0x1d0] sm:$0xff] }
 0x125   :  { %v1131_v23 = vadd.f32 %v1121_v19, %v1085_v29  ;;  %v504_v19 = vadd.f32 %v4940_v5, %v251_v54  ;;  %v1036_v29 = vadd.f32 %v5044_v3, %v5042_v2  ;;  %v5199_v5 = vld [vmem:[%s5671_s2] ss:$0 sm:$0xff]  ;;  %v1063_v54 = vadd.f32 %v5068_v37, %v998_v56  ;;  %v5214_v2 = vld [vmem:[#allocation4 + $0x148] sm:$0xff]  ;;  %1866 = vmatpush.bf16.msra.mxu3 %v5201_v62  ;;  %v5229_v56 = vld [vmem:[#allocation4 + $0x100] sm:$0xff]  ;;  %s2801_s2 = sshll.u32 %s4188_s30, 4  ;;  %s2802_s2 = int_to_ptr.vmem [resolvable:$true] %s2801_s2 }
 0x126   :  { %v5221_v3 = vld [vmem:[#allocation4 + $0x1c8] sm:$0xff]  ;;  %1700 = vmatpush.bf16.msra.mxu1 %v5214_v2 }
 0x127   :  { %v1086_v21 = vadd.f32 %v5070_v40, %v1036_v29  ;;  %v5231_v29 = vld [vmem:[#allocation4 + $0x140] sm:$0xff] }
 0x129   :  { %1867 = vmatpush.bf16.msra.mxu3 %v5221_v3 }
 0x12a   :  { %1701 = vmatpush.bf16.msra.mxu1 %v5231_v29 }
 0x12b   :  { %v1154_v4 = vpop.f32.mrf.mxu2  ;;  %v1100_v32 = vpop.f32.mrf.mxu0 }
 0x12c   :  { %v1177_v50 = vpop.f32.mrf.mxu3  ;;  %v1164_v38 = vadd.f32 %v1154_v4, %v1108_v22  ;;  %v1123_v36 = vpop.f32.mrf.mxu1  ;;  %v690_v22 = vadd.f32 %v4944_v8, %v504_v19  ;;  %v1109_v37 = vadd.f32 %v1100_v32, %v1063_v54  ;;  %v5235_v32 = vld [vmem:[#allocation4 + $0x180] sm:$0xff] }
 0x12d   :  { %v1187_v57 = vadd.f32 %v1177_v50, %v1131_v23  ;;  %v778_v23 = vadd.f32 %v4946_v9, %v592_v53  ;;  %v5219_v9 = vld [vmem:[#allocation4 + $0x188] sm:$0xff]  ;;  %v1132_v40 = vadd.f32 %v1123_v36, %v1086_v21  ;;  %v1039_v50 = vadd.f32 %v5076_v42, %v5074_v41  ;;  %v5237_v36 = vld [vmem:[#allocation4 + $0x1c0] sm:$0xff] }
 0x12e   :  { %v876_v8 = vadd.f32 %v4958_v24, %v690_v22  ;;  %1786 = vmatpush.bf16.msra.mxu2 %v5219_v9  ;;  %v1001_v42 = vadd.f32 %v4974_v47, %v4972_v44  ;;  %1868 = vmatpush.bf16.msra.mxu3 %v5237_v36 }
 0x12f   :  { %v1195_v48 = vmax.f32 %v1164_v38, %v1187_v57  ;;  %v5212_v38 = vld [vmem:[#allocation4 + $0x108] sm:$0xff]  ;;  %v964_v15 = vadd.f32 %v4960_v25, %v778_v23  ;;  %v1087_v54 = vadd.f32 %v5110_v17, %v1039_v50  ;;  %v1003_v17 = vadd.f32 %v5006_v61, %v5004_v55 }
 0x130   :  { %1619 = vmatpush.bf16.msra.mxu0 %v5212_v38  ;;  %v1064_v23 = vadd.f32 %v5108_v52, %v1001_v42 }
 0x131   :  { %v1199_v27 = vmax.f32 %v5801_v26, %v1195_v48  ;;  %v1192_v41 = vmax.f32 %v876_v8, %v964_v15  ;;  %v1065_v50 = vadd.f32 %v5142_v11, %v1003_v17  ;;  %v5803_v11 = vmax.f32 %v4982_v30, %v4984_v31  ;;  %v5272_v30 = vld [vmem:[#allocation4 + $0x230] sm:$0xff] }
 0x132   :  { %1787 = vmatpush.bf16.msra.mxu2 %v5235_v32  ;;  %v5274_v31 = vld [vmem:[#allocation4 + $0x270] sm:$0xff] }
 0x133   :  { %v1207_v18 = vadd.f32 %v5199_v5, %v1199_v27  ;;  %v1156_v57 = vpop.f32.mrf.mxu2  ;;  %v1103_v25 = vpop.f32.mrf.mxu0 }
 0x134   :  { %v1179_v4 = vpop.f32.mrf.mxu3  ;;  %v1165_v19 = vadd.f32 %v1156_v57, %v1109_v37  ;;  %v1126_v48 = vpop.f32.mrf.mxu1  ;;  %1620 = vmatpush.bf16.msra.mxu0 %v5229_v56  ;;  %v1110_v27 = vadd.f32 %v1103_v25, %v1064_v23  ;;  %v1041_v37 = vadd.f32 %v5116_v49, %v5114_v12 }
 0x135   :  { %v1211_v24 = vmax.f32 %v1207_v18, 0.0  ;;  %v1188_v53 = vadd.f32 %v1179_v4, %v1132_v40  ;;  %v1133_v8 = vadd.f32 %v1126_v48, %v1087_v54 }
 0x137   :  { %1215 = vst [vmem:[#allocation2] sm:$0xff] %v1211_v24  ;;  %v1196_v22 = vmax.f32 %v1165_v19, %v1188_v53  ;;  %v1088_v24 = vadd.f32 %v5144_v63, %v1041_v37  ;;  %v5802_v19 = vmax.f32 %v4966_v34, %v4968_v35  ;;  %v5298_v37 = vld [vmem:[#allocation4 + $0x218] sm:$0xff] }
 0x139   :  { %v1200_v21 = vmax.f32 %v1192_v41, %v1196_v22 }
 0x13b   :  { %v1208_v26 = vadd.f32 %v5199_v5, %v1200_v21  ;;  %v1159_v44 = vpop.f32.mrf.mxu2  ;;  %v1105_v57 = vpop.f32.mrf.mxu0 }
 0x13c   :  { %v1182_v47 = vpop.f32.mrf.mxu3  ;;  %v1166_v18 = vadd.f32 %v1159_v44, %v1110_v27  ;;  %v1128_v4 = vpop.f32.mrf.mxu1  ;;  %v1111_v48 = vadd.f32 %v1105_v57, %v1065_v50  ;;  %v5264_v44 = vld [vmem:[#allocation4 + $0x238] sm:$0xff]  ;;  %v5314_v57 = vld [vmem:[#allocation4 + $0x250] sm:$0xff] }
 0x13d   :  { %v1212_v15 = vmax.f32 %v1208_v26, 0.0  ;;  %v1189_v52 = vadd.f32 %v1182_v47, %v1133_v8  ;;  %v1134_v41 = vadd.f32 %v1128_v4, %v1088_v24  ;;  %v5266_v47 = vld [vmem:[#allocation4 + $0x278] sm:$0xff]  ;;  %v5328_v4 = vld [vmem:[#allocation4 + $0x200] sm:$0xff] }
 0x13e   :  { %v5805_v50 = vld [vmem:[#allocation20_spill] sm:$0xff] }
 0x13f   :  { %1216 = vst [vmem:[#allocation2 + $0x8] sm:$0xff] %v1212_v15  ;;  %v1197_v40 = vmax.f32 %v1166_v18, %v1189_v52  ;;  %v5282_v15 = vld [vmem:[#allocation4 + $0x268] sm:$0xff]  ;;  %v5288_v18 = vld [vmem:[#allocation4 + $0x220] sm:$0xff] }
 0x141   :  { %v1201_v53 = vmax.f32 %v5802_v19, %v1197_v40  ;;  %v5300_v40 = vld [vmem:[#allocation4 + $0x258] sm:$0xff] }
 0x143   :  { %v1209_v25 = vadd.f32 %v5199_v5, %v1201_v53  ;;  %v1161_v55 = vpop.f32.mrf.mxu2  ;;  %v5808_v53 = vld [vmem:[#allocation10_spill] sm:$0xff] }
 0x144   :  { %v1184_v61 = vpop.f32.mrf.mxu3  ;;  %v1167_v49 = vadd.f32 %v1161_v55, %v1111_v48  ;;  %v5811_v55 = vld [vmem:[#allocation31_spill] sm:$0xff] }
 0x145   :  { %v1213_v42 = vmax.f32 %v1209_v25, 0.0  ;;  %v1190_v12 = vadd.f32 %v1184_v61, %v1134_v41  ;;  %v5809_v25 = vld [vmem:[#allocation11_spill] sm:$0xff]  ;;  %v5810_v41 = vld [vmem:[#allocation30_spill] sm:$0xff]  ;;  %v5812_v61 = vld [vmem:[#allocation12_spill] sm:$0xff] }
 0x146   :  { %v1257_v34 = vld [vmem:[#allocation2 + $0x1] ss:$2 sm:$0xff]  ;;  %v1219_v35 = vld [vmem:[#allocation2] ss:$2 sm:$0xff] }
 0x147   :  { %1217 = vst [vmem:[#allocation2 + $0x10] sm:$0xff] %v1213_v42  ;;  %v1198_v22 = vmax.f32 %v1167_v49, %v1190_v12  ;;  %v5813_v42 = vld [vmem:[#allocation23_spill] sm:$0xff]  ;;  %v5814_v49 = vld [vmem:[#allocation34_spill] sm:$0xff] }
 0x148   :  { %v5815_v12 = vld [vmem:[#allocation35_spill] sm:$0xff] }
 0x149   :  { %v1202_v23 = vmax.f32 %v5803_v11, %v1198_v22  ;;  %v5816_v22 = vld [vmem:[#allocation13_spill] sm:$0xff]  ;;  %v5817_v11 = vld [vmem:[#allocation14_spill] sm:$0xff] }
 0x14b   :  { %v1210_v63 = vadd.f32 %v5199_v5, %v1202_v23  ;;  %v5280_v5 = vld [vmem:[#allocation4 + $0x228] sm:$0xff] }
 0x14c   :  { %v5818_v23 = vld [vmem:[#allocation38_spill] sm:$0xff] }
 0x14d   :  { %v1214_v54 = vmax.f32 %v1210_v63, 0.0  ;;  %v5819_v63 = vld [vmem:[#allocation39_spill] sm:$0xff] }
 0x14e   :  { %v1544_v17 = vld [vmem:[#allocation2 + $0x2] ss:$2 sm:$0xff] }
 0x14f   :  { %1218 = vst [vmem:[#allocation2 + $0x18] sm:$0xff] %v1214_v54  ;;  %v1878_v19 = vld [vmem:[#allocation2 + $0x4] ss:$2 sm:$0xff] }
 0x150   :  { %v5820_v54 = vld [vmem:[#allocation24_spill] sm:$0xff] }
 0x156   :  { %v1259_v21 = vld [vmem:[#allocation2 + $0x11] ss:$2 sm:$0x1f]  ;;  %v1221_v26 = vld [vmem:[#allocation2 + $0x10] ss:$2 sm:$0x1f] }
 0x157   :  { %v5262_v27 = vpack.c.bf16 %v1259_v21, %v1257_v34  ;;  %v1222_v8 = vpack.c.bf16 %v1221_v26, %v1219_v35  ;;  %v1713_v52 = vld [vmem:[#allocation2 + $0x13] ss:$2 sm:$0x1f]  ;;  %v1880_v24 = vld [vmem:[#allocation2 + $0x14] ss:$2 sm:$0x1f] }
 0x158   :  { %v5340_v48 = vpack.c.bf16 %v1880_v24, %v1878_v19  ;;  %v5821_v34 = vld [vmem:[#allocation25_spill] sm:$0xff]  ;;  %v5822_v35 = vld [vmem:[#allocation42_spill] sm:$0xff]  ;;  %v5823_v21 = vld [vmem:[#allocation43_spill] sm:$0xff] }
 0x159   :  { %1334 = vmatmul.bf16.vlgmr.msrb.gmra.mxu0 %v5262_v27  ;;  %1396 = vmatmul.bf16.vlgmr.msrb.gmra.mxu1 %v1222_v8  ;;  %v5824_v26 = vld [vmem:[#allocation15_spill] sm:$0xff] }
 0x15a   :  { %1475 = vmatmul.bf16.vlgmr.msrb.gmra.mxu2 %v5262_v27  ;;  %1537 = vmatmul.bf16.vlgmr.msrb.gmra.mxu3 %v1222_v8  ;;  %v5825_v8 = vld [vmem:[#allocation16_spill] sm:$0xff]  ;;  %v4099_v24 = vld [vmem:[%s5674_s5 + $0xf8] sm:$0xff] }
 0x15b   :  { %1947 = vmatpush.bf16.msrb.mxu0 %v5264_v44  ;;  %2028 = vmatpush.bf16.msrb.mxu1 %v5266_v47  ;;  %v4079_v19 = vld [vmem:[%s5674_s5 + $0x58] sm:$0xff] }
 0x15c   :  { %2044 = vmatpush.bf16.msrb.mxu2 %v4976_v59  ;;  %2058 = vmatpush.bf16.msrb.mxu3 %v4978_v60  ;;  %v5290_v59 = vld [vmem:[#allocation4 + $0x260] sm:$0xff] }
 0x15d   :  { %v1546_v60 = vld [vmem:[#allocation2 + $0x12] ss:$2 sm:$0x1f] }
 0x15f   :  { %1948 = vmatpush.bf16.msrb.mxu0 %v5272_v30  ;;  %2029 = vmatpush.bf16.msrb.mxu1 %v5274_v31 }
 0x160   :  { %2045 = vmatpush.bf16.msrb.mxu2 %v4990_v33  ;;  %2059 = vmatpush.bf16.msrb.mxu3 %v4992_v39  ;;  %v5296_v33 = vpack.c.bf16 %v1546_v60, %v1544_v17  ;;  %v1711_v39 = vld [vmem:[#allocation2 + $0x3] ss:$2 sm:$0xff] }
 0x161   :  { %v5826_v60 = vld [vmem:[#allocation17_spill] sm:$0xff] }
 0x162   :  { %v5828_v17 = vld [vmem:[#allocation21_spill] sm:$0xff] }
 0x163   :  { %1949 = vmatpush.bf16.msrb.mxu0 %v5280_v5  ;;  %2030 = vmatpush.bf16.msrb.mxu1 %v5282_v15 }
 0x164   :  { %2046 = vmatpush.bf16.msrb.mxu2 %v5014_v0  ;;  %2060 = vmatpush.bf16.msrb.mxu3 %v5016_v1  ;;  %v5304_v0 = vpack.c.bf16 %v1713_v52, %v1711_v39  ;;  %v5312_v1 = vld [vmem:[#allocation4 + $0x210] sm:$0xff]  ;;  %v5827_v52 = vld [vmem:[#allocation18_spill] sm:$0xff] }
 0x165   :  { %v5829_v39 = vld [vmem:[#allocation22_spill] sm:$0xff] }
 0x167   :  { %1950 = vmatpush.bf16.msrb.mxu0 %v5288_v18  ;;  %2031 = vmatpush.bf16.msrb.mxu1 %v5290_v59 }
 0x168   :  { %2047 = vmatpush.bf16.msrb.mxu2 %v5024_v13  ;;  %2061 = vmatpush.bf16.msrb.mxu3 %v5026_v16  ;;  %v5320_v13 = vld [vmem:[#allocation4 + $0x208] sm:$0xff] }
 0x169   :  { %1621 = vmatmul.bf16.vlgmr.msra.gmra.mxu0 %v5296_v33  ;;  %1702 = vmatmul.bf16.vlgmr.msra.gmra.mxu1 %v5296_v33  ;;  %v5322_v16 = vld [vmem:[#allocation4 + $0x248] sm:$0xff] }
 0x16a   :  { %1788 = vmatmul.bf16.vlgmr.msra.gmra.mxu2 %v5304_v0  ;;  %1869 = vmatmul.bf16.vlgmr.msra.gmra.mxu3 %v5304_v0 }
 0x16b   :  { %1951 = vmatpush.bf16.msrb.mxu0 %v5298_v37  ;;  %2032 = vmatpush.bf16.msrb.mxu1 %v5300_v40 }
 0x16c   :  { %2048 = vmatpush.bf16.msrb.mxu2 %v5046_v6  ;;  %2062 = vmatpush.bf16.msrb.mxu3 %v5048_v7  ;;  %v5330_v6 = vld [vmem:[#allocation4 + $0x240] sm:$0xff]  ;;  %v5804_v7 = vld [vmem:[#allocation19_spill] sm:$0xff] }
 0x16f   :  { %1952 = vmatpush.bf16.msrb.mxu0 %v5312_v1  ;;  %2033 = vmatpush.bf16.msrb.mxu1 %v5314_v57 }
 0x170   :  { %2049 = vmatpush.bf16.msrb.mxu2 %v5058_v14  ;;  %2063 = vmatpush.bf16.msrb.mxu3 %v5060_v28  ;;  %v5806_v14 = vld [vmem:[#allocation26_spill] sm:$0xff]  ;;  %v5807_v28 = vld [vmem:[#allocation27_spill] sm:$0xff] }
 0x173   :  { %1953 = vmatpush.bf16.msrb.mxu0 %v5320_v13  ;;  %2034 = vmatpush.bf16.msrb.mxu1 %v5322_v16 }
 0x174   :  { %2050 = vmatpush.bf16.msrb.mxu2 %v5804_v7  ;;  %2064 = vmatpush.bf16.msrb.mxu3 %v5805_v50  ;;  %v5830_v7 = vld [vmem:[#allocation28_spill] sm:$0xff]  ;;  %v4091_v50 = vld [vmem:[%s5674_s5 + $0xb8] sm:$0xff] }
 0x177   :  { %1954 = vmatpush.bf16.msrb.mxu0 %v5328_v4  ;;  %2035 = vmatpush.bf16.msrb.mxu1 %v5330_v6 }
 0x178   :  { %2051 = vmatpush.bf16.msrb.mxu2 %v5806_v14  ;;  %2065 = vmatpush.bf16.msrb.mxu3 %v5807_v28 }
 0x17a   :  { %1955 = vmatmul.bf16.vlgmr.msrb.gmra.mxu0 %v5340_v48  ;;  %2036 = vmatmul.bf16.vlgmr.msrb.gmra.mxu1 %v5340_v48 }
 0x17b   :  { %2072 = vmatpush.bf16.msra.mxu0 %v5808_v53  ;;  %2086 = vmatpush.bf16.msra.mxu1 %v5809_v25 }
 0x17c   :  { %2100 = vmatpush.bf16.msra.mxu2 %v5810_v41  ;;  %2116 = vmatpush.bf16.msra.mxu3 %v5811_v55  ;;  %v4090_v41 = vld [vmem:[%s5674_s5 + $0xb0] sm:$0xff] }
 0x17d   :  { %2052 = vmatmul.bf16.vlgmr.msrb.gmra.mxu2 %v5296_v33  ;;  %2066 = vmatmul.bf16.vlgmr.msrb.gmra.mxu3 %v5262_v27  ;;  %v4098_v55 = vld [vmem:[%s5674_s5 + $0xf0] sm:$0xff] }
 0x17f   :  { %2073 = vmatpush.bf16.msra.mxu0 %v5812_v61  ;;  %2087 = vmatpush.bf16.msra.mxu1 %v5813_v42  ;;  %v4078_v61 = vld [vmem:[%s5674_s5 + $0x50] sm:$0xff]  ;;  %v4073_v42 = vld [vmem:[%s5674_s5 + $0x28] sm:$0xff] }
 0x180   :  { %2101 = vmatpush.bf16.msra.mxu2 %v5814_v49  ;;  %2117 = vmatpush.bf16.msra.mxu3 %v5815_v12  ;;  %v4089_v49 = vld [vmem:[%s5674_s5 + $0xa8] sm:$0xff] }
 0x181   :  { %v4097_v12 = vld [vmem:[%s5674_s5 + $0xe8] sm:$0xff] }
 0x183   :  { %2074 = vmatpush.bf16.msra.mxu0 %v5816_v22  ;;  %2088 = vmatpush.bf16.msra.mxu1 %v5817_v11 }
 0x184   :  { %2102 = vmatpush.bf16.msra.mxu2 %v5818_v23  ;;  %2118 = vmatpush.bf16.msra.mxu3 %v5819_v63  ;;  %v4077_v23 = vld [vmem:[%s5674_s5 + $0x48] sm:$0xff] }
 0x187   :  { %2075 = vmatpush.bf16.msra.mxu0 %v5820_v54  ;;  %2089 = vmatpush.bf16.msra.mxu1 %v5821_v34  ;;  %v4072_v34 = vld [vmem:[%s5674_s5 + $0x20] sm:$0xff] }
 0x188   :  { %2103 = vmatpush.bf16.msra.mxu2 %v5822_v35  ;;  %2119 = vmatpush.bf16.msra.mxu3 %v5823_v21  ;;  %v4088_v35 = vld [vmem:[%s5674_s5 + $0xa0] sm:$0xff] }
 0x189   :  { %v4096_v21 = vld [vmem:[%s5674_s5 + $0xe0] sm:$0xff] }
 0x18b   :  { %2076 = vmatpush.bf16.msra.mxu0 %v5824_v26  ;;  %2090 = vmatpush.bf16.msra.mxu1 %v5825_v8  ;;  %v4076_v26 = vld [vmem:[%s5674_s5 + $0x40] sm:$0xff]  ;;  %v4071_v8 = vld [vmem:[%s5674_s5 + $0x18] sm:$0xff] }
 0x18c   :  { %2104 = vmatpush.bf16.msra.mxu2 %v5168_v10  ;;  %2120 = vmatpush.bf16.msra.mxu3 %v5170_v58  ;;  %v5831_v10 = vld [vmem:[#allocation29_spill] sm:$0xff]  ;;  %v5832_v58 = vld [vmem:[#allocation32_spill] sm:$0xff] }
 0x18f   :  { %2077 = vmatpush.bf16.msra.mxu0 %v5826_v60  ;;  %2091 = vmatpush.bf16.msra.mxu1 %v5827_v52  ;;  %v4087_v60 = vld [vmem:[%s5674_s5 + $0x98] sm:$0xff] }
 0x190   :  { %2105 = vmatpush.bf16.msra.mxu2 %v5186_v45  ;;  %2121 = vmatpush.bf16.msra.mxu3 %v5188_v46  ;;  %v5833_v45 = vld [vmem:[#allocation33_spill] sm:$0xff]  ;;  %v5834_v46 = vld [vmem:[#allocation36_spill] sm:$0xff]  ;;  %v4095_v52 = vld [vmem:[%s5674_s5 + $0xd8] sm:$0xff] }
 0x193   :  { %2078 = vmatpush.bf16.msra.mxu0 %v5828_v17  ;;  %2092 = vmatpush.bf16.msra.mxu1 %v5829_v39  ;;  %v4107_v17 = vld [vmem:[%s5674_s5 + $0x138] sm:$0xff] }
 0x194   :  { %2106 = vmatpush.bf16.msra.mxu2 %v5212_v38  ;;  %2122 = vmatpush.bf16.msra.mxu3 %v5214_v2  ;;  %v5835_v38 = vld [vmem:[#allocation37_spill] sm:$0xff]  ;;  %v5836_v2 = vld [vmem:[#allocation40_spill] sm:$0xff] }
 0x197   :  { %2079 = vmatpush.bf16.msra.mxu0 %v5830_v7  ;;  %2093 = vmatpush.bf16.msra.mxu1 %v5831_v10  ;;  %v4070_v10 = vld [vmem:[%s5674_s5 + $0x10] sm:$0xff] }
 0x198   :  { %2107 = vmatpush.bf16.msra.mxu2 %v5229_v56  ;;  %2123 = vmatpush.bf16.msra.mxu3 %v5231_v29  ;;  %v5837_v56 = vld [vmem:[#allocation41_spill] sm:$0xff]  ;;  %v5838_v29 = vld [vmem:[#allocation44_spill] sm:$0xff] }
 0x19a   :  { %2080 = vmatmul.bf16.vlgmr.msra.gmra.mxu0 %v5296_v33  ;;  %2094 = vmatmul.bf16.vlgmr.msra.gmra.mxu1 %v5262_v27  ;;  %v5839_v27 = vld [vmem:[#allocation45_spill] sm:$0xff] }
 0x19b   :  { %2132 = vmatpush.bf16.msrb.mxu0 %v5832_v58  ;;  %2148 = vmatpush.bf16.msrb.mxu1 %v5833_v45  ;;  %v4086_v58 = vld [vmem:[%s5674_s5 + $0x90] sm:$0xff] }
 0x19c   :  { %2169 = vmatpush.bf16.msrb.mxu2 %v5264_v44  ;;  %2185 = vmatpush.bf16.msrb.mxu3 %v5266_v47  ;;  %v4094_v45 = vld [vmem:[%s5674_s5 + $0xd0] sm:$0xff] }
 0x19d   :  { %2108 = vmatmul.bf16.vlgmr.msra.gmra.mxu2 %v5304_v0  ;;  %2124 = vmatmul.bf16.vlgmr.msra.gmra.mxu3 %v5304_v0 }
 0x19f   :  { %2133 = vmatpush.bf16.msrb.mxu0 %v5834_v46  ;;  %2149 = vmatpush.bf16.msrb.mxu1 %v5835_v38  ;;  %v4106_v46 = vld [vmem:[%s5674_s5 + $0x130] sm:$0xff] }
 0x1a0   :  { %2170 = vmatpush.bf16.msrb.mxu2 %v5272_v30  ;;  %2186 = vmatpush.bf16.msrb.mxu3 %v5274_v31 }
 0x1a3   :  { %2134 = vmatpush.bf16.msrb.mxu0 %v5836_v2  ;;  %2150 = vmatpush.bf16.msrb.mxu1 %v5837_v56  ;;  %v4069_v56 = vld [vmem:[%s5674_s5 + $0x8] sm:$0xff] }
 0x1a4   :  { %2171 = vmatpush.bf16.msrb.mxu2 %v5280_v5  ;;  %2187 = vmatpush.bf16.msrb.mxu3 %v5282_v15 }
 0x1a7   :  { %2135 = vmatpush.bf16.msrb.mxu0 %v5838_v29  ;;  %2151 = vmatpush.bf16.msrb.mxu1 %v5839_v27  ;;  %v4085_v29 = vld [vmem:[%s5674_s5 + $0x88] sm:$0xff] }
 0x1a8   :  { %2172 = vmatpush.bf16.msrb.mxu2 %v5288_v18  ;;  %2188 = vmatpush.bf16.msrb.mxu3 %v5290_v59  ;;  %v4093_v27 = vld [vmem:[%s5674_s5 + $0xc8] sm:$0xff] }
 0x1ab   :  { %2136 = vmatpush.bf16.msrb.mxu0 %v5172_v20  ;;  %2152 = vmatpush.bf16.msrb.mxu1 %v5174_v43  ;;  %v2167_v20 = vld [vmem:[#allocation2 + $0x15] ss:$2 sm:$0x1f]  ;;  %v2165_v43 = vld [vmem:[#allocation2 + $0x5] ss:$2 sm:$0xff] }
 0x1ac   :  { %2173 = vmatpush.bf16.msrb.mxu2 %v5298_v37  ;;  %2189 = vmatpush.bf16.msrb.mxu3 %v5300_v40  ;;  %v4083_v37 = vld [vmem:[%s5674_s5 + $0x78] sm:$0xff]  ;;  %v4082_v40 = vld [vmem:[%s5674_s5 + $0x70] sm:$0xff] }
 0x1af   :  { %2137 = vmatpush.bf16.msrb.mxu0 %v5190_v51  ;;  %2153 = vmatpush.bf16.msrb.mxu1 %v5201_v62  ;;  %v2168_v51 = vpack.c.bf16 %v2167_v20, %v2165_v43  ;;  %v4105_v20 = vld [vmem:[%s5674_s5 + $0x128] sm:$0xff]  ;;  %v4068_v43 = vld [vmem:[%s5674_s5] sm:$0xff] }
 0x1b0   :  { %2174 = vmatpush.bf16.msrb.mxu2 %v5312_v1  ;;  %2190 = vmatpush.bf16.msrb.mxu3 %v5314_v57  ;;  %v4081_v57 = vld [vmem:[%s5674_s5 + $0x68] sm:$0xff] }
 0x1b3   :  { %2138 = vmatpush.bf16.msrb.mxu0 %v5219_v9  ;;  %2154 = vmatpush.bf16.msrb.mxu1 %v5221_v3 }
 0x1b4   :  { %2175 = vmatpush.bf16.msrb.mxu2 %v5320_v13  ;;  %2191 = vmatpush.bf16.msrb.mxu3 %v5322_v16 }
 0x1b7   :  { %2139 = vmatpush.bf16.msrb.mxu0 %v5235_v32  ;;  %2155 = vmatpush.bf16.msrb.mxu1 %v5237_v36 }
 0x1b8   :  { %2176 = vmatpush.bf16.msrb.mxu2 %v5328_v4  ;;  %2192 = vmatpush.bf16.msrb.mxu3 %v5330_v6  ;;  %v4080_v4 = vld [vmem:[%s5674_s5 + $0x60] sm:$0xff]  ;;  %v4075_v6 = vld [vmem:[%s5674_s5 + $0x38] sm:$0xff] }
 0x1ba   :  { %2140 = vmatmul.bf16.vlgmr.msrb.gmra.mxu0 %v5340_v48  ;;  %2156 = vmatmul.bf16.vlgmr.msrb.gmra.mxu1 %v5340_v48  ;;  %v4074_v48 = vld [vmem:[%s5674_s5 + $0x30] sm:$0xff] }
 0x1bb   :  { %2177 = vmatmul.bf16.vlgmr.msrb.gmra.mxu2 %v2168_v51  ;;  %2193 = vmatmul.bf16.vlgmr.msrb.gmra.mxu3 %v2168_v51  ;;  %v4084_v51 = vld [vmem:[%s5674_s5 + $0x80] sm:$0xff] }
 0x1bc   :  { %2303 = vmatpush.bf16.msra.mxu0 %v4083_v37  ;;  %2364 = vmatpush.bf16.msra.mxu1 %v4075_v6  ;;  %v4092_v37 = vld [vmem:[%s5674_s5 + $0xc0] sm:$0xff] }
 0x1bd   :  { %2445 = vmatpush.bf16.msra.mxu2 %v4091_v50  ;;  %2527 = vmatpush.bf16.msra.mxu3 %v4099_v24 }
 0x1c0   :  { %2304 = vmatpush.bf16.msra.mxu0 %v4082_v40  ;;  %2365 = vmatpush.bf16.msra.mxu1 %v4074_v48  ;;  %v4104_v40 = vld [vmem:[%s5674_s5 + $0x120] sm:$0xff] }
 0x1c1   :  { %2446 = vmatpush.bf16.msra.mxu2 %v4090_v41  ;;  %2528 = vmatpush.bf16.msra.mxu3 %v4098_v55 }
 0x1c4   :  { %2305 = vmatpush.bf16.msra.mxu0 %v4081_v57  ;;  %2366 = vmatpush.bf16.msra.mxu1 %v4073_v42 }
 0x1c5   :  { %2447 = vmatpush.bf16.msra.mxu2 %v4089_v49  ;;  %2529 = vmatpush.bf16.msra.mxu3 %v4097_v12 }
 0x1c8   :  { %2306 = vmatpush.bf16.msra.mxu0 %v4080_v4  ;;  %2367 = vmatpush.bf16.msra.mxu1 %v4072_v34 }
 0x1c9   :  { %2448 = vmatpush.bf16.msra.mxu2 %v4088_v35  ;;  %2530 = vmatpush.bf16.msra.mxu3 %v4096_v21 }
 0x1cc   :  { %2307 = vmatpush.bf16.msra.mxu0 %v4079_v19  ;;  %2368 = vmatpush.bf16.msra.mxu1 %v4071_v8 }
 0x1cd   :  { %2449 = vmatpush.bf16.msra.mxu2 %v4087_v60  ;;  %2531 = vmatpush.bf16.msra.mxu3 %v4095_v52 }
 0x1d0   :  { %2308 = vmatpush.bf16.msra.mxu0 %v4078_v61  ;;  %2369 = vmatpush.bf16.msra.mxu1 %v4070_v10  ;;  %v4100_v10 = vld [vmem:[%s5674_s5 + $0x100] sm:$0xff] }
 0x1d1   :  { %2450 = vmatpush.bf16.msra.mxu2 %v4086_v58  ;;  %2532 = vmatpush.bf16.msra.mxu3 %v4094_v45 }
 0x1d4   :  { %2309 = vmatpush.bf16.msra.mxu0 %v4077_v23  ;;  %2370 = vmatpush.bf16.msra.mxu1 %v4069_v56 }
 0x1d5   :  { %2451 = vmatpush.bf16.msra.mxu2 %v4085_v29  ;;  %2533 = vmatpush.bf16.msra.mxu3 %v4093_v27  ;;  %v4114_v29 = vld [vmem:[%s5676_s7 + $0x30] sm:$0xff] }
 0x1d6   :  { %v5414_v62 = vpop.f32.mrf.mxu0  ;;  %v5416_v9 = vpop.f32.mrf.mxu1 }
 0x1d7   :  { %v1398_v57 = vadd.f32 %v5416_v9, %v5414_v62 }
 0x1d8   :  { %2310 = vmatpush.bf16.msra.mxu0 %v4076_v26  ;;  %2371 = vmatpush.bf16.msra.mxu1 %v4068_v43 }
 0x1d9   :  { %2452 = vmatpush.bf16.msra.mxu2 %v4084_v51  ;;  %2534 = vmatpush.bf16.msra.mxu3 %v4092_v37 }
 0x1dc   :  { %2609 = vmatpush.bf16.msrb.mxu0 %v4107_v17 }
 0x1dd   :  { %v5418_v3 = vpop.f32.mrf.mxu2  ;;  %v5420_v32 = vpop.f32.mrf.mxu3 }
 0x1de   :  { %v5422_v36 = vpop.f32.mrf.mxu0  ;;  %v5424_v44 = vpop.f32.mrf.mxu1  ;;  %v1539_v50 = vadd.f32 %v5420_v32, %v5418_v3  ;;  %v4103_v32 = vld [vmem:[%s5674_s5 + $0x118] sm:$0xff] }
 0x1e0   :  { %2610 = vmatpush.bf16.msrb.mxu0 %v4106_v46 }
 0x1e4   :  { %2611 = vmatpush.bf16.msrb.mxu0 %v4105_v20 }
 0x1e5   :  { %v5426_v47 = vpop.f32.mrf.mxu2  ;;  %v5428_v30 = vpop.f32.mrf.mxu3 }
 0x1e6   :  { %v5430_v31 = vpop.f32.mrf.mxu0  ;;  %v5432_v5 = vpop.f32.mrf.mxu1 }
 0x1e7   :  { %v1627_v24 = vadd.f32 %v5430_v31, %v1398_v57  ;;  %v1708_v41 = vadd.f32 %v5432_v5, %v1539_v50 }
 0x1e8   :  { %2612 = vmatpush.bf16.msrb.mxu0 %v4104_v40 }
 0x1ec   :  { %2613 = vmatpush.bf16.msrb.mxu0 %v4103_v32 }
 0x1ed   :  { %v5434_v15 = vpop.f32.mrf.mxu2  ;;  %v5436_v18 = vpop.f32.mrf.mxu3 }
 0x1ee   :  { %v5438_v59 = vpop.f32.mrf.mxu0  ;;  %v5440_v33 = vpop.f32.mrf.mxu1  ;;  %v1794_v62 = vadd.f32 %v5434_v15, %v1627_v24  ;;  %v1875_v9 = vadd.f32 %v5436_v18, %v1708_v41  ;;  %v1400_v15 = vadd.f32 %v5424_v44, %v5422_v36  ;;  %v1541_v18 = vadd.f32 %v5428_v30, %v5426_v47  ;;  %v4129_v36 = vld [vmem:[%s5673_s4] ss:$0 sm:$0xff]  ;;  %v4101_v44 = vld [vmem:[%s5674_s5 + $0x108] sm:$0xff]  ;;  %v4111_v41 = vld [vmem:[%s5676_s7 + $0x18] sm:$0xff] }
 0x1f5   :  { %v5448_v0 = vpop.f32.mrf.mxu2  ;;  %v5450_v1 = vpop.f32.mrf.mxu3 }
 0x1f7   :  { %v5455_v13 = vpop.f32.mrf.mxu0  ;;  %v5457_v16 = vpop.f32.mrf.mxu1 }
 0x1f8   :  { %v1961_v31 = vadd.f32 %v5455_v13, %v1794_v62  ;;  %v2042_v5 = vadd.f32 %v5457_v16, %v1875_v9  ;;  %v1628_v13 = vadd.f32 %v5438_v59, %v1400_v15  ;;  %v1709_v16 = vadd.f32 %v5440_v33, %v1541_v18  ;;  %v4108_v62 = vld [vmem:[%s5676_s7] sm:$0xff]  ;;  %v4123_v9 = vld [vmem:[%s5678_s9 + $0x38] sm:$0xff] }
 0x1f9   :  { %2781 = vmatpush.bf16.msrb.mxu2 %v4123_v9 }
 0x1fa   :  { %v2201_v34 = vmax.f32 %v1961_v31, %v2042_v5  ;;  %v1795_v47 = vadd.f32 %v5448_v0, %v1628_v13  ;;  %v1876_v33 = vadd.f32 %v5450_v1, %v1709_v16  ;;  %v4120_v5 = vld [vmem:[%s5678_s9 + $0x20] sm:$0xff] }
 0x1ff   :  { %v5478_v53 = vpop.f32.mrf.mxu0  ;;  %v5480_v25 = vpop.f32.mrf.mxu1 }
 0x200   :  { %v5471_v14 = vpop.f32.mrf.mxu2  ;;  %v5473_v28 = vpop.f32.mrf.mxu3  ;;  %v2043_v52 = vadd.f32 %v5480_v25, %v1876_v33  ;;  %v4115_v25 = vld [vmem:[%s5676_s7 + $0x38] sm:$0xff]  ;;  %v4131_v33 = vld [vmem:[%s5677_s8] ss:$0 sm:$0xff] }
 0x201   :  { %v2068_v55 = vadd.f32 %v5473_v28, %v5471_v14  ;;  %v4102_v14 = vld [vmem:[%s5674_s5 + $0x110] sm:$0xff]  ;;  %2698 = vmatpush.bf16.msrb.mxu1 %v4115_v25 }
 0x202   :  { %2614 = vmatpush.bf16.msrb.mxu0 %v4102_v14  ;;  %v4119_v14 = vld [vmem:[%s5678_s9 + $0x18] sm:$0xff] }
 0x205   :  { %2699 = vmatpush.bf16.msrb.mxu1 %v4114_v29 }
 0x206   :  { %2615 = vmatpush.bf16.msrb.mxu0 %v4101_v44 }
 0x208   :  { %v5503_v22 = vpop.f32.mrf.mxu2  ;;  %v5505_v11 = vpop.f32.mrf.mxu3 }
 0x209   :  { %v2070_v35 = vadd.f32 %v5505_v11, %v5503_v22  ;;  %v1962_v11 = vadd.f32 %v5478_v53, %v1795_v47 }
 0x20a   :  { %2616 = vmatpush.bf16.msrb.mxu0 %v4100_v10 }
 0x217   :  { %v2081_v63 = vpop.f32.mrf.mxu0  ;;  %v2095_v54 = vpop.f32.mrf.mxu1 }
 0x218   :  { %v2096_v61 = vadd.f32 %v2095_v54, %v2081_v63 }
 0x21f   :  { %v2083_v38 = vpop.f32.mrf.mxu0  ;;  %v2097_v2 = vpop.f32.mrf.mxu1 }
 0x220   :  { %v2109_v39 = vpop.f32.mrf.mxu2  ;;  %v2125_v7 = vpop.f32.mrf.mxu3  ;;  %v2098_v21 = vadd.f32 %v2097_v2, %v2083_v38  ;;  %v2202_v38 = vmax.f32 %v1962_v11, %v2043_v52 }
 0x221   :  { %v2114_v42 = vadd.f32 %v2109_v39, %v2068_v55  ;;  %v2130_v3 = vadd.f32 %v2125_v7, %v2096_v61  ;;  %v4110_v55 = vld [vmem:[%s5676_s7 + $0x10] sm:$0xff]  ;;  %v4109_v61 = vld [vmem:[%s5676_s7 + $0x8] sm:$0xff] }
 0x228   :  { %v2111_v4 = vpop.f32.mrf.mxu2  ;;  %v2127_v6 = vpop.f32.mrf.mxu3 }
 0x229   :  { %v2115_v8 = vadd.f32 %v2111_v4, %v2070_v35  ;;  %v2131_v60 = vadd.f32 %v2127_v6, %v2098_v21 }
 0x237   :  { %v2141_v19 = vpop.f32.mrf.mxu0  ;;  %v2157_v48 = vpop.f32.mrf.mxu1 }
 0x238   :  { %v2146_v49 = vadd.f32 %v2141_v19, %v2114_v42  ;;  %v2162_v12 = vadd.f32 %v2157_v48, %v2130_v3  ;;  %v4113_v19 = vld [vmem:[%s5676_s7 + $0x28] sm:$0xff]  ;;  %v4112_v48 = vld [vmem:[%s5676_s7 + $0x20] sm:$0xff]  ;;  %v4122_v42 = vld [vmem:[%s5678_s9 + $0x30] sm:$0xff] }
 0x239   :  { %2700 = vmatpush.bf16.msrb.mxu1 %v4113_v19  ;;  %2782 = vmatpush.bf16.msrb.mxu2 %v4122_v42  ;;  %v4121_v3 = vld [vmem:[%s5678_s9 + $0x28] sm:$0xff] }
 0x23d   :  { %2701 = vmatpush.bf16.msrb.mxu1 %v4112_v48  ;;  %2783 = vmatpush.bf16.msrb.mxu2 %v4121_v3 }
 0x23e   :  { %v2178_v28 = vpop.f32.mrf.mxu2  ;;  %v2194_v23 = vpop.f32.mrf.mxu3 }
 0x23f   :  { %v2183_v63 = vadd.f32 %v2178_v28, %v2146_v49  ;;  %v2199_v54 = vadd.f32 %v2194_v23, %v2162_v12  ;;  %v2143_v30 = vpop.f32.mrf.mxu0  ;;  %v2159_v59 = vpop.f32.mrf.mxu1 }
 0x240   :  { %v2147_v39 = vadd.f32 %v2143_v30, %v2115_v8  ;;  %v2163_v7 = vadd.f32 %v2159_v59, %v2131_v60  ;;  %v4117_v30 = vld [vmem:[%s5678_s9 + $0x8] sm:$0xff]  ;;  %v4116_v59 = vld [vmem:[%s5678_s9] sm:$0xff] }
 0x241   :  { %v2203_v26 = vmax.f32 %v2183_v63, %v2199_v54  ;;  %2702 = vmatpush.bf16.msrb.mxu1 %v4111_v41  ;;  %2784 = vmatpush.bf16.msrb.mxu2 %v4120_v5  ;;  %v4118_v63 = vld [vmem:[%s5678_s9 + $0x10] sm:$0xff]  ;;  %s2803_s9 = sshll.u32 %s5680_s11, 4  ;;  %s2804_s9 = int_to_ptr.hbm [resolvable:$true] %s2803_s9 }
 0x243   :  { %v2205_v22 = vmax.f32 %v2201_v34, %v2203_v26  ;;  %v4130_v34 = vld [vmem:[%s5675_s6] ss:$0 sm:$0xff] }
 0x245   :  { %v2211_v17 = vadd.f32 %v4129_v36, %v2205_v22  ;;  %2703 = vmatpush.bf16.msrb.mxu1 %v4110_v55  ;;  %2785 = vmatpush.bf16.msrb.mxu2 %v4119_v14 }
 0x246   :  { %v2180_v0 = vpop.f32.mrf.mxu2  ;;  %v2196_v58 = vpop.f32.mrf.mxu3 }
 0x247   :  { %v2213_v45 = vmax.f32 %v2211_v17, 0.0  ;;  %v2184_v46 = vadd.f32 %v2180_v0, %v2147_v39  ;;  %v2200_v1 = vadd.f32 %v2196_v58, %v2163_v7  ;;  %v4132_v17 = vld [vmem:[%s5679_s10] ss:$0 sm:$0xff] }
 0x249   :  { %2215 = vst [vmem:[#allocation3] sm:$0xff] %v2213_v45  ;;  %v2204_v2 = vmax.f32 %v2184_v46, %v2200_v1  ;;  %2704 = vmatpush.bf16.msrb.mxu1 %v4109_v61  ;;  %2786 = vmatpush.bf16.msrb.mxu2 %v4118_v63 }
 0x24b   :  { %v2206_v53 = vmax.f32 %v2202_v38, %v2204_v2 }
 0x24d   :  { %v2212_v56 = vadd.f32 %v4129_v36, %v2206_v53  ;;  %2705 = vmatpush.bf16.msrb.mxu1 %v4108_v62  ;;  %2787 = vmatpush.bf16.msrb.mxu2 %v4117_v30 }
 0x24f   :  { %v2214_v27 = vmax.f32 %v2212_v56, 0.0 }
 0x251   :  { %2216 = vst [vmem:[#allocation3 + $0x8] sm:$0x1f] %v2214_v27  ;;  %2788 = vmatpush.bf16.msrb.mxu2 %v4116_v59 }
 0x258   :  { %v2236_v20 = vld [vmem:[#allocation3 + $0x1] ss:$8 sm:$0x3]  ;;  %v2217_v43 = vld [vmem:[#allocation3] ss:$8 sm:$0x3] }
 0x259   :  { %v2237_v51 = vpack.c.bf16 %v2236_v20, %v2236_v20  ;;  %v2218_v37 = vpack.c.bf16 %v2217_v43, %v2217_v43  ;;  %v2378_v40 = vld [vmem:[#allocation3 + $0x2] ss:$8 sm:$0x3]  ;;  %v2460_v57 = vld [vmem:[#allocation3 + $0x3] ss:$8 sm:$0x3] }
 0x25a   :  { %v2379_v4 = vpack.c.bf16 %v2378_v40, %v2378_v40  ;;  %v2461_v6 = vpack.c.bf16 %v2460_v57, %v2460_v57  ;;  %v2542_v50 = vld [vmem:[#allocation3 + $0x4] ss:$8 sm:$0x3] }
 0x25b   :  { %2311 = vmatmul.bf16.vlgmr.msra.gmra.mxu0 %v2237_v51  ;;  %2372 = vmatmul.bf16.vlgmr.msra.gmra.mxu1 %v2218_v37  ;;  %v2543_v24 = vpack.c.bf16 %v2542_v50, %v2542_v50 }
 0x25c   :  { %2453 = vmatmul.bf16.vlgmr.msra.gmra.mxu2 %v2379_v4  ;;  %2535 = vmatmul.bf16.vlgmr.msra.gmra.mxu3 %v2461_v6 }
 0x26b   :  { %2617 = vmatmul.bf16.vlgmr.msrb.gmra.mxu0 %v2543_v24 }
 0x2d8   :  { %v2312_v32 = vpop.f32.mrf.mxu0  ;;  %v2373_v31 = vpop.f32.mrf.mxu1 }
 0x2d9   :  { %v2374_v28 = vadd.f32 %v2373_v31, %v2312_v32 }
 0x2df   :  { %v2454_v49 = vpop.f32.mrf.mxu2  ;;  %v2536_v12 = vpop.f32.mrf.mxu3 }
 0x2e0   :  { %v2314_v15 = vpop.f32.mrf.mxu0  ;;  %v2375_v18 = vpop.f32.mrf.mxu1  ;;  %v2458_v23 = vadd.f32 %v2454_v49, %v2374_v28 }
 0x2e2   :  { %v2540_v54 = vadd.f32 %v2536_v12, %v2458_v23 }
 0x2e7   :  { %v2456_v13 = vpop.f32.mrf.mxu2  ;;  %v2538_v16 = vpop.f32.mrf.mxu3 }
 0x2e8   :  { %v2618_v35 = vpop.f32.mrf.mxu0 }
 0x2e9   :  { %v2622_v21 = vadd.f32 %v2618_v35, %v2540_v54 }
 0x2eb   :  { %v2627_v26 = vadd.f32 %v4130_v34, %v2622_v21 }
 0x2ed   :  { %v2628_v36 = vmax.f32 %v2627_v26, 0.0 }
 0x2ef   :  { %v2629_v44 = vpack.c.bf16 %v2628_v36, %v2628_v36 }
 0x2f0   :  { %v2620_v47 = vpop.f32.mrf.mxu0 }
 0x2f1   :  { %2706 = vmatmul.bf16.vlgmr.msrb.gmra.mxu1 %v2629_v44 }
 0x36e   :  { %v2707_v8 = vpop.f32.mrf.mxu1 }
 0x36f   :  { %v2708_v60 = vadd.f32 %v4131_v33, %v2707_v8 }
 0x371   :  { %v2711_v22 = vmax.f32 %v2708_v60, 0.0 }
 0x373   :  { %v2712_v11 = vpack.c.bf16 %v2711_v22, %v2711_v22 }
 0x375   :  { %2789 = vmatmul.bf16.vlgmr.msrb.gmra.mxu2 %v2712_v11 }
 0x376   :  { %v2709_v52 = vpop.f32.mrf.mxu1 }
 0x3f8   :  { %v2790_v39 = vpop.f32.mrf.mxu2 }
 0x3f9   :  { %v2791_v7 = vadd.f32 %v4132_v17, %v2790_v39 }
 0x3fb   :  { %2795 = vst.msk [vmem:[#allocation7] sm:$0x3] %vm2794_vm0, %v2791_v7 }
 0x3fc   :  { %2806 = dma.vmem_to_hbm [thread:$0]  %s2802_s2, 32, %s2804_s9, [#allocation6]  }
 0x400   :  { %v2792_v10 = vpop.f32.mrf.mxu2 }
 0x401   :  { %4183 = dma.done.wait [#allocation6], 32  }
 0x402   :  { %4184 = vsyncadd [#allocation6], 4294967264 }
 0x403   :  { %2811 = vsyncpa [#allocation5], 1 }
 0x404   :  { %2812 = vsyncpa [#allocation6], 1 }

</bundles_post_ra>
